<compile_context>
chip_gen: v7x
topology: tpu7x:2x2x1
jax: 0.10.0
libtpu: 0.0.40
codegen_flags: <defaults>
</compile_context>

<pallas_src>
import functools
import math

import jax
import jax.numpy as jnp
from jax.experimental import pallas as pl
from jax.experimental.pallas import tpu as pltpu

LN_EPS = 1e-16
# bf16 MXU operands (f32 accumulation).  Flip to jnp.float32 for exact-parity
# debugging at the cost of ~2x matmul throughput and 2x weight traffic.
MXU_DTYPE = jnp.bfloat16
# approx=True uses the EUP reciprocal (free slot); relative error ~1e-3.
APPROX_RECIPROCAL = True


# ----------------------------- in-kernel helpers ----------------------------

def _mm(a, b):
    """a @ b on the MXU with f32 accumulation."""
    return jnp.dot(a.astype(MXU_DTYPE), b.astype(MXU_DTYPE),
                   preferred_element_type=jnp.float32)


def _mm_nt(a, b):
    """a @ b.T without an explicit transpose (contract last dims on the MXU)."""
    return jax.lax.dot_general(
        a.astype(MXU_DTYPE), b.astype(MXU_DTYPE),
        dimension_numbers=(((1,), (1,)), ((), ())),
        preferred_element_type=jnp.float32)


def _layernorm(x, a, b):
    """Matches torch LayerNorm above: unbiased std, eps added to std."""
    d = x.shape[-1]
    mean = jnp.mean(x, axis=-1, keepdims=True)
    diff = x - mean
    var = jnp.sum(diff * diff, axis=-1, keepdims=True) * (1.0 / (d - 1))
    std = jnp.sqrt(var)
    inv = pl.reciprocal(std + LN_EPS, approx=APPROX_RECIPROCAL)
    return a * diff * inv + b


# ----------------------------- Pallas kernels -------------------------------

def _attn_sublayer_kernel(*refs, n_heads, self_attention):
    """One grid step = one batch element.

    Fuses: pre-LayerNorm, per-head Q/K/V projections, masked softmax attention,
    per-head output-projection accumulation and the residual add.
    """
    if self_attention:
        (x_ref, mask_ref, ln_a_ref, ln_b_ref,
         wq_ref, bq_ref, wk_ref, bk_ref, wv_ref, bv_ref,
         wo_ref, bo_ref, o_ref) = refs
        kv_ref = None
    else:
        (x_ref, kv_ref, mask_ref, ln_a_ref, ln_b_ref,
         wq_ref, bq_ref, wk_ref, bk_ref, wv_ref, bv_ref,
         wo_ref, bo_ref, o_ref) = refs

    x = x_ref[0]                                   # (Sq, D) residual stream
    mask = mask_ref[0]                             # (Sq, Sk) 0/1 float mask
    y = _layernorm(x, ln_a_ref[...], ln_b_ref[...])
    # self-attn: K/V come from the normalized stream; cross-attn: raw memory.
    kv_in = y if self_attention else kv_ref[0]     # (Sk, D)

    sq, d = x.shape
    dk = d // n_heads
    scale = 1.0 / math.sqrt(dk)
    neg = jnp.float32(-1e9)

    # Per-head weights arrive as (H, D, dk) / (H, dk, D); indexing the leading
    # axis with a static h is a free offset view (no lane slicing, no concat).
    # TODO(synk): at production Sq/Sk, block the Sk axis flash-style (online
    # softmax with m/l/acc scratch) instead of the dense (Sq, Sk) scores.
    acc = jnp.zeros((sq, d), jnp.float32)
    for h in range(n_heads):
        qh = _mm(y, wq_ref[h]) + bq_ref[h]         # (Sq, dk)
        kh = _mm(kv_in, wk_ref[h]) + bk_ref[h]     # (Sk, dk)
        vh = _mm(kv_in, wv_ref[h]) + bv_ref[h]     # (Sk, dk)
        s = _mm_nt(qh, kh) * scale                 # (Sq, Sk)
        # 0/1 float mask; exact-equality compare is fine for binary masks.
        s = jnp.where(mask == 0, neg, s)
        s = s - jnp.max(s, axis=-1, keepdims=True)
        p = jnp.exp(s)
        p = p * pl.reciprocal(jnp.sum(p, axis=-1, keepdims=True),
                              approx=APPROX_RECIPROCAL)
        ctx = _mm(p, vh)                           # (Sq, dk)
        acc = acc + _mm(ctx, wo_ref[h])            # head's W_O contribution

    # Fused residual add + output bias.
    o_ref[0] = x + acc + bo_ref[...]


def _ffn_sublayer_kernel(*refs, apply_final_norm):
    """Fuses: pre-LayerNorm, W1 + ReLU, W2, residual add (whole batch folded),
    optionally followed by the Decoder's final LayerNorm."""
    if apply_final_norm:
        (x_ref, ln_a_ref, ln_b_ref, w1_ref, b1_ref, w2_ref, b2_ref,
         fn_a_ref, fn_b_ref, o_ref) = refs
    else:
        (x_ref, ln_a_ref, ln_b_ref, w1_ref, b1_ref, w2_ref, b2_ref,
         o_ref) = refs

    x = x_ref[...]                                 # (B*S, D)
    y = _layernorm(x, ln_a_ref[...], ln_b_ref[...])
    h = jnp.maximum(_mm(y, w1_ref[...]) + b1_ref[...], 0.0)
    out = x + _mm(h, w2_ref[...]) + b2_ref[...]
    if apply_final_norm:
        out = _layernorm(out, fn_a_ref[...], fn_b_ref[...])
    o_ref[...] = out


def _layernorm_kernel(x_ref, a_ref, b_ref, o_ref):
    o_ref[...] = _layernorm(x_ref[...], a_ref[...], b_ref[...])


# ----------------------------- wrappers --------------------------------------

def _row(v):
    return v.reshape(1, -1)


def _rep(shape):
    nd = len(shape)
    return pl.BlockSpec(shape, lambda b: (0,) * nd)


def _split_heads_w(w, n_heads):
    """(D_in, D_out) -> (H, D_in, dk), head h = w[:, h*dk:(h+1)*dk]."""
    d_in, d_out = w.shape
    dk = d_out // n_heads
    return jnp.transpose(w.reshape(d_in, n_heads, dk), (1, 0, 2)).astype(MXU_DTYPE)


def _split_heads_b(b, n_heads):
    dk = b.shape[0] // n_heads
    return b.reshape(n_heads, 1, dk)


def _prep_mask(mask, batch, s_q, s_k):
    # Accepts (B,1,1,Sk) or (B,1,Sq,Sk); drops the head dim instead of
    # broadcasting per-head.
    # TODO(synk): at production sizes pass int8 / generate the causal mask
    # in-kernel with broadcasted_iota to avoid the f32 mask bandwidth.
    m = jnp.broadcast_to(mask, (batch, 1, s_q, s_k))
    return m[:, 0].astype(jnp.float32)             # (B, Sq, Sk)


def attn_sublayer(x, kv, mask, ln_a, ln_b, p, *, self_attention):
    B, Sq, D = x.shape
    H = p["h"]
    dk = D // H
    Sk = Sq if self_attention else kv.shape[1]
    mask_b = _prep_mask(mask, B, Sq, Sk)

    # Host-side, once per call: per-head weight slabs + bf16 cast.
    wq = _split_heads_w(p["wq"], H)
    wk = _split_heads_w(p["wk"], H)
    wv = _split_heads_w(p["wv"], H)
    wo = p["wo"].reshape(H, dk, D).astype(MXU_DTYPE)
    bq = _split_heads_b(p["bq"], H)
    bk = _split_heads_b(p["bk"], H)
    bv = _split_heads_b(p["bv"], H)

    args = [x]
    in_specs = [pl.BlockSpec((1, Sq, D), lambda b: (b, 0, 0))]   # residual stream
    if not self_attention:
        args.append(kv)
        in_specs.append(pl.BlockSpec((1, Sk, D), lambda b: (b, 0, 0)))
    args += [mask_b, _row(ln_a), _row(ln_b), wq, bq, wk, bk, wv, bv, wo,
             _row(p["bo"])]
    # TODO(synk): when scaling D, mark the replicated weight specs
    # pipeline_mode=pl.Buffered(1) and set vmem_limit_bytes explicitly
    # (v7x: 64 MiB physical / 32 MiB default scoped limit).
    in_specs += [
        pl.BlockSpec((1, Sq, Sk), lambda b: (b, 0, 0)),          # mask
        _rep((1, D)), _rep((1, D)),                              # ln_a, ln_b
        _rep((H, D, dk)), _rep((H, 1, dk)),                      # wq, bq
        _rep((H, D, dk)), _rep((H, 1, dk)),                      # wk, bk
        _rep((H, D, dk)), _rep((H, 1, dk)),                      # wv, bv
        _rep((H, dk, D)), _rep((1, D)),                          # wo, bo
    ]
    kernel = functools.partial(_attn_sublayer_kernel, n_heads=H,
                               self_attention=self_attention)
    return pl.pallas_call(
        kernel,
        out_shape=jax.ShapeDtypeStruct((B, Sq, D), jnp.float32),
        grid=(B,),
        in_specs=in_specs,
        out_specs=pl.BlockSpec((1, Sq, D), lambda b: (b, 0, 0)),
        compiler_params=pltpu.CompilerParams(
            dimension_semantics=("parallel",)),
    )(*args)


def ffn_sublayer(x, ln_a, ln_b, p, *, final_norm=None):
    B, S, D = x.shape
    Dff = p["w1"].shape[1]
    x2 = x.reshape(B * S, D)                       # fold batch: single grid step
    w1 = p["w1"].astype(MXU_DTYPE)
    w2 = p["w2"].astype(MXU_DTYPE)

    args = [x2, _row(ln_a), _row(ln_b), w1, _row(p["b1"]), w2, _row(p["b2"])]
    in_specs = [
        _rep((B * S, D)),
        _rep((1, D)), _rep((1, D)),
        _rep((D, Dff)), _rep((1, Dff)),
        _rep((Dff, D)), _rep((1, D)),
    ]
    if final_norm is not None:
        fa, fb = final_norm
        args += [_row(fa), _row(fb)]
        in_specs += [_rep((1, D)), _rep((1, D))]

    kernel = functools.partial(_ffn_sublayer_kernel,
                               apply_final_norm=final_norm is not None)
    # TODO(synk): output last dim D=32 is not lane-dense (32/128 lanes); at
    # production D keep block last dims multiples of 128 for unmasked vst.
    out = pl.pallas_call(
        kernel,
        out_shape=jax.ShapeDtypeStruct((B * S, D), jnp.float32),
        grid=(1,),
        in_specs=in_specs,
        out_specs=_rep((B * S, D)),
        compiler_params=pltpu.CompilerParams(
            dimension_semantics=("arbitrary",)),
    )(*args)
    return out.reshape(B, S, D)


def layernorm(x, a, b):
    """Standalone final LayerNorm (only used if there are zero decoder layers)."""
    B, S, D = x.shape
    x2 = x.reshape(B * S, D)
    out = pl.pallas_call(
        _layernorm_kernel,
        out_shape=jax.ShapeDtypeStruct((B * S, D), jnp.float32),
        grid=(1,),
        in_specs=[_rep((B * S, D)), _rep((1, D)), _rep((1, D))],
        out_specs=_rep((B * S, D)),
        compiler_params=pltpu.CompilerParams(
            dimension_semantics=("arbitrary",)),
    )(x2, _row(a), _row(b))
    return out.reshape(B, S, D)


def decoder_layer(x, memory, src_mask, tgt_mask, p, *, final_norm=None):
    # sublayer 0: masked self-attention (pre-norm, residual) -- one pallas_call
    x = attn_sublayer(x, None, tgt_mask, p["ln0_a"], p["ln0_b"],
                      p["self_attn"], self_attention=True)
    # sublayer 1: cross-attention on encoder output -- one pallas_call
    x = attn_sublayer(x, memory, src_mask, p["ln1_a"], p["ln1_b"],
                      p["src_attn"], self_attention=False)
    # sublayer 2: position-wise feed forward (+ fused final LN on last layer)
    x = ffn_sublayer(x, p["ln2_a"], p["ln2_b"], p["ff"], final_norm=final_norm)
    return x


def decoder_forward(params, x, encoded, src_mask, target_mask):
    layers = params["layers"]
    n = len(layers)
    if n == 0:
        return layernorm(x, params["norm_a"], params["norm_b"])
    for i, lp in enumerate(layers):
        fn = (params["norm_a"], params["norm_b"]) if i == n - 1 else None
        x = decoder_layer(x, encoded, src_mask, target_mask, lp, final_norm=fn)
    # TODO(synk): original PyTorch Decoder.forward discards self.norm(x) and
    # returns None; we return the normalized tensor so it can be verified.
    return x


# ----------------------------- parameters ------------------------------------

def init_params(key, n_layers, d_model, n_heads, d_ff):
    def lin(k, din, dout):
        kw, kb = jax.random.split(k)
        return (0.02 * jax.random.normal(kw, (din, dout), jnp.float32),
                0.02 * jax.random.normal(kb, (dout,), jnp.float32))

    layers = []
    for _ in range(n_layers):
        key, *ks = jax.random.split(key, 11)
        wq, bq = lin(ks[0], d_model, d_model)
        wk, bk = lin(ks[1], d_model, d_model)
        wv, bv = lin(ks[2], d_model, d_model)
        wo, bo = lin(ks[3], d_model, d_model)
        wq2, bq2 = lin(ks[4], d_model, d_model)
        wk2, bk2 = lin(ks[5], d_model, d_model)
        wv2, bv2 = lin(ks[6], d_model, d_model)
        wo2, bo2 = lin(ks[7], d_model, d_model)
        w1, b1 = lin(ks[8], d_model, d_ff)
        w2, b2 = lin(ks[9], d_ff, d_model)
        layers.append({
            "ln0_a": jnp.ones((d_model,), jnp.float32),
            "ln0_b": jnp.zeros((d_model,), jnp.float32),
            "ln1_a": jnp.ones((d_model,), jnp.float32),
            "ln1_b": jnp.zeros((d_model,), jnp.float32),
            "ln2_a": jnp.ones((d_model,), jnp.float32),
            "ln2_b": jnp.zeros((d_model,), jnp.float32),
            "self_attn": {"h": n_heads, "wq": wq, "bq": bq, "wk": wk, "bk": bk,
                          "wv": wv, "bv": bv, "wo": wo, "bo": bo},
            "src_attn": {"h": n_heads, "wq": wq2, "bq": bq2, "wk": wk2, "bk": bk2,
                         "wv": wv2, "bv": bv2, "wo": wo2, "bo": bo2},
            "ff": {"w1": w1, "b1": b1, "w2": w2, "b2": b2},
        })
    return {
        "layers": layers,
        "norm_a": jnp.ones((d_model,), jnp.float32),
        "norm_b": jnp.zeros((d_model,), jnp.float32),
    }


# ----------------------------- main -------------------------------------------

if __name__ == "__main__":
    B, S_TGT, S_SRC, D, H, D_FF, N = 2, 8, 8, 32, 4, 64, 2

    key = jax.random.PRNGKey(0)
    k_p, k_x, k_m = jax.random.split(key, 3)

    params = init_params(k_p, N, D, H, D_FF)

    x = jax.random.normal(k_x, (B, S_TGT, D), jnp.float32)
    encoded = jax.random.normal(k_m, (B, S_SRC, D), jnp.float32)
    # src_mask: all source positions visible; target_mask: causal mask
    src_mask = jnp.ones((B, 1, 1, S_SRC), jnp.float32)
    target_mask = jnp.broadcast_to(
        jnp.tril(jnp.ones((S_TGT, S_TGT), jnp.float32))[None, None],
        (B, 1, S_TGT, S_TGT))

    out = decoder_forward(params, x, encoded, src_mask, target_mask)
    out = jax.block_until_ready(out)
    assert out.shape == (B, S_TGT, D)
    assert bool(jnp.all(jnp.isfinite(out)))
    print("KERNEL_OK")
</pallas_src>

<mosaic_0001>
module attributes {stable_mosaic.version = 11 : i64} {
  func.func @_attn_sublayer_kernel(%arg0: i32, %arg1: memref<1x8x32xf32, #tpu.memory_space<vmem>>, %arg2: memref<1x8x8xf32, #tpu.memory_space<vmem>>, %arg3: memref<1x32xf32, #tpu.memory_space<vmem>>, %arg4: memref<1x32xf32, #tpu.memory_space<vmem>>, %arg5: memref<4x32x8xbf16, #tpu.memory_space<vmem>>, %arg6: memref<4x1x8xf32, #tpu.memory_space<vmem>>, %arg7: memref<4x32x8xbf16, #tpu.memory_space<vmem>>, %arg8: memref<4x1x8xf32, #tpu.memory_space<vmem>>, %arg9: memref<4x32x8xbf16, #tpu.memory_space<vmem>>, %arg10: memref<4x1x8xf32, #tpu.memory_space<vmem>>, %arg11: memref<4x8x32xbf16, #tpu.memory_space<vmem>>, %arg12: memref<1x32xf32, #tpu.memory_space<vmem>>, %arg13: memref<1x8x32xf32, #tpu.memory_space<vmem>>) attributes {dimension_semantics = [#tpu.dimension_semantics<parallel>], iteration_bounds = array<i64: 2>, scalar_prefetch = 0 : i64, scratch_operands = 0 : i64, tpu.core_type = #tpu.core_type<tc>, window_params = [{transform_indices = @transform_0, window_bounds = array<i64: 1, 8, 32>}, {transform_indices = @transform_1, window_bounds = array<i64: 1, 8, 8>}, {pipeline_mode = #tpu.pipeline_mode<synchronous>, transform_indices = @transform_2, window_bounds = array<i64: 1, 32>}, {pipeline_mode = #tpu.pipeline_mode<synchronous>, transform_indices = @transform_3, window_bounds = array<i64: 1, 32>}, {pipeline_mode = #tpu.pipeline_mode<synchronous>, transform_indices = @transform_4, window_bounds = array<i64: 4, 32, 8>}, {pipeline_mode = #tpu.pipeline_mode<synchronous>, transform_indices = @transform_5, window_bounds = array<i64: 4, 1, 8>}, {pipeline_mode = #tpu.pipeline_mode<synchronous>, transform_indices = @transform_6, window_bounds = array<i64: 4, 32, 8>}, {pipeline_mode = #tpu.pipeline_mode<synchronous>, transform_indices = @transform_7, window_bounds = array<i64: 4, 1, 8>}, {pipeline_mode = #tpu.pipeline_mode<synchronous>, transform_indices = @transform_8, window_bounds = array<i64: 4, 32, 8>}, {pipeline_mode = #tpu.pipeline_mode<synchronous>, transform_indices = @transform_9, window_bounds = array<i64: 4, 1, 8>}, {pipeline_mode = #tpu.pipeline_mode<synchronous>, transform_indices = @transform_10, window_bounds = array<i64: 4, 8, 32>}, {pipeline_mode = #tpu.pipeline_mode<synchronous>, transform_indices = @transform_11, window_bounds = array<i64: 1, 32>}, {transform_indices = @transform_12, window_bounds = array<i64: 1, 8, 32>}]} {
    %c0 = arith.constant 0 : index
    %c0_0 = arith.constant 0 : index
    %c0_1 = arith.constant 0 : index
    %0 = vector.load %arg1[%c0, %c0_0, %c0_1] : memref<1x8x32xf32, #tpu.memory_space<vmem>>, vector<1x8x32xf32>
    %1 = vector.shape_cast %0 : vector<1x8x32xf32> to vector<8x32xf32>
    %c0_2 = arith.constant 0 : index
    %c0_3 = arith.constant 0 : index
    %c0_4 = arith.constant 0 : index
    %2 = vector.load %arg2[%c0_2, %c0_3, %c0_4] : memref<1x8x8xf32, #tpu.memory_space<vmem>>, vector<1x8x8xf32>
    %3 = vector.shape_cast %2 : vector<1x8x8xf32> to vector<8x8xf32>
    %c0_5 = arith.constant 0 : index
    %c0_6 = arith.constant 0 : index
    %4 = vector.load %arg3[%c0_5, %c0_6] : memref<1x32xf32, #tpu.memory_space<vmem>>, vector<1x32xf32>
    %c0_7 = arith.constant 0 : index
    %c0_8 = arith.constant 0 : index
    %5 = vector.load %arg4[%c0_7, %c0_8] : memref<1x32xf32, #tpu.memory_space<vmem>>, vector<1x32xf32>
    %cst = arith.constant dense<0.000000e+00> : vector<8xf32>
    %6 = vector.multi_reduction <add>, %1, %cst [1] : vector<8x32xf32> to vector<8xf32>
    %7 = vector.shape_cast %6 : vector<8xf32> to vector<8x1xf32>
    %cst_9 = arith.constant 3.200000e+01 : f32
    %8 = vector.broadcast %cst_9 : f32 to vector<8x1xf32>
    %9 = arith.divf %7, %8 : vector<8x1xf32>
    %10 = vector.broadcast %9 : vector<8x1xf32> to vector<8x32xf32>
    %11 = arith.subf %1, %10 : vector<8x32xf32>
    %12 = arith.mulf %11, %11 : vector<8x32xf32>
    %cst_10 = arith.constant dense<0.000000e+00> : vector<8xf32>
    %13 = vector.multi_reduction <add>, %12, %cst_10 [1] : vector<8x32xf32> to vector<8xf32>
    %14 = vector.shape_cast %13 : vector<8xf32> to vector<8x1xf32>
    %cst_11 = arith.constant 0.0322580636 : f32
    %15 = vector.broadcast %cst_11 : f32 to vector<8x1xf32>
    %16 = arith.mulf %14, %15 : vector<8x1xf32>
    %17 = math.sqrt %16 : vector<8x1xf32>
    %cst_12 = arith.constant 1.000000e-16 : f32
    %18 = vector.broadcast %cst_12 : f32 to vector<8x1xf32>
    %19 = arith.addf %17, %18 : vector<8x1xf32>
    %20 = tpu.reciprocal %19 {approx = true} : vector<8x1xf32> -> vector<8x1xf32>
    %21 = vector.broadcast %4 : vector<1x32xf32> to vector<8x32xf32>
    %22 = arith.mulf %21, %11 : vector<8x32xf32>
    %23 = vector.broadcast %20 : vector<8x1xf32> to vector<8x32xf32>
    %24 = arith.mulf %22, %23 : vector<8x32xf32>
    %25 = vector.broadcast %5 : vector<1x32xf32> to vector<8x32xf32>
    %26 = arith.addf %24, %25 : vector<8x32xf32>
    %cst_13 = arith.constant 0.000000e+00 : f32
    %27 = vector.broadcast %cst_13 : f32 to vector<8x32xf32>
    %c0_14 = arith.constant 0 : index
    %c0_15 = arith.constant 0 : index
    %c0_16 = arith.constant 0 : index
    %28 = vector.load %arg5[%c0_14, %c0_15, %c0_16] : memref<4x32x8xbf16, #tpu.memory_space<vmem>>, vector<1x32x8xbf16>
    %29 = vector.shape_cast %28 : vector<1x32x8xbf16> to vector<32x8xbf16>
    %30 = arith.truncf %26 : vector<8x32xf32> to vector<8x32xbf16>
    %cst_17 = arith.constant dense<0.000000e+00> : vector<8x8xf32>
    %31 = tpu.matmul %30, %29, %cst_17 {dimension_numbers = #tpu.dot_dimension_numbers<[1], [0], [0], [1], [0, 0, 1, 1], [], []>} : vector<8x32xbf16>, vector<32x8xbf16>, vector<8x8xf32> -> vector<8x8xf32>
    %c0_18 = arith.constant 0 : index
    %c0_19 = arith.constant 0 : index
    %c0_20 = arith.constant 0 : index
    %32 = vector.load %arg6[%c0_18, %c0_19, %c0_20] : memref<4x1x8xf32, #tpu.memory_space<vmem>>, vector<1x1x8xf32>
    %33 = vector.shape_cast %32 : vector<1x1x8xf32> to vector<1x8xf32>
    %34 = vector.broadcast %33 : vector<1x8xf32> to vector<8x8xf32>
    %35 = arith.addf %31, %34 : vector<8x8xf32>
    %c0_21 = arith.constant 0 : index
    %c0_22 = arith.constant 0 : index
    %c0_23 = arith.constant 0 : index
    %36 = vector.load %arg7[%c0_21, %c0_22, %c0_23] : memref<4x32x8xbf16, #tpu.memory_space<vmem>>, vector<1x32x8xbf16>
    %37 = vector.shape_cast %36 : vector<1x32x8xbf16> to vector<32x8xbf16>
    %38 = arith.truncf %26 : vector<8x32xf32> to vector<8x32xbf16>
    %cst_24 = arith.constant dense<0.000000e+00> : vector<8x8xf32>
    %39 = tpu.matmul %38, %37, %cst_24 {dimension_numbers = #tpu.dot_dimension_numbers<[1], [0], [0], [1], [0, 0, 1, 1], [], []>} : vector<8x32xbf16>, vector<32x8xbf16>, vector<8x8xf32> -> vector<8x8xf32>
    %c0_25 = arith.constant 0 : index
    %c0_26 = arith.constant 0 : index
    %c0_27 = arith.constant 0 : index
    %40 = vector.load %arg8[%c0_25, %c0_26, %c0_27] : memref<4x1x8xf32, #tpu.memory_space<vmem>>, vector<1x1x8xf32>
    %41 = vector.shape_cast %40 : vector<1x1x8xf32> to vector<1x8xf32>
    %42 = vector.broadcast %41 : vector<1x8xf32> to vector<8x8xf32>
    %43 = arith.addf %39, %42 : vector<8x8xf32>
    %c0_28 = arith.constant 0 : index
    %c0_29 = arith.constant 0 : index
    %c0_30 = arith.constant 0 : index
    %44 = vector.load %arg9[%c0_28, %c0_29, %c0_30] : memref<4x32x8xbf16, #tpu.memory_space<vmem>>, vector<1x32x8xbf16>
    %45 = vector.shape_cast %44 : vector<1x32x8xbf16> to vector<32x8xbf16>
    %46 = arith.truncf %26 : vector<8x32xf32> to vector<8x32xbf16>
    %cst_31 = arith.constant dense<0.000000e+00> : vector<8x8xf32>
    %47 = tpu.matmul %46, %45, %cst_31 {dimension_numbers = #tpu.dot_dimension_numbers<[1], [0], [0], [1], [0, 0, 1, 1], [], []>} : vector<8x32xbf16>, vector<32x8xbf16>, vector<8x8xf32> -> vector<8x8xf32>
    %c0_32 = arith.constant 0 : index
    %c0_33 = arith.constant 0 : index
    %c0_34 = arith.constant 0 : index
    %48 = vector.load %arg10[%c0_32, %c0_33, %c0_34] : memref<4x1x8xf32, #tpu.memory_space<vmem>>, vector<1x1x8xf32>
    %49 = vector.shape_cast %48 : vector<1x1x8xf32> to vector<1x8xf32>
    %50 = vector.broadcast %49 : vector<1x8xf32> to vector<8x8xf32>
    %51 = arith.addf %47, %50 : vector<8x8xf32>
    %52 = arith.truncf %35 : vector<8x8xf32> to vector<8x8xbf16>
    %53 = arith.truncf %43 : vector<8x8xf32> to vector<8x8xbf16>
    %cst_35 = arith.constant dense<0.000000e+00> : vector<8x8xf32>
    %54 = tpu.matmul %52, %53, %cst_35 {dimension_numbers = #tpu.dot_dimension_numbers<[1], [1], [0], [0], [0, 0, 1, 0], [], []>} : vector<8x8xbf16>, vector<8x8xbf16>, vector<8x8xf32> -> vector<8x8xf32>
    %cst_36 = arith.constant 0.353553385 : f32
    %55 = vector.broadcast %cst_36 : f32 to vector<8x8xf32>
    %56 = arith.mulf %54, %55 : vector<8x8xf32>
    %cst_37 = arith.constant 0.000000e+00 : f32
    %57 = vector.broadcast %cst_37 : f32 to vector<8x8xf32>
    %58 = arith.cmpf oeq, %3, %57 : vector<8x8xf32>
    %cst_38 = arith.constant -1.000000e+09 : f32
    %59 = vector.broadcast %cst_38 : f32 to vector<8x8xf32>
    %60 = arith.select %58, %59, %56 : vector<8x8xi1>, vector<8x8xf32>
    %cst_39 = arith.constant dense<0xFF800000> : vector<8xf32>
    %61 = vector.multi_reduction <maximumf>, %60, %cst_39 [1] : vector<8x8xf32> to vector<8xf32>
    %62 = vector.shape_cast %61 : vector<8xf32> to vector<8x1xf32>
    %63 = vector.broadcast %62 : vector<8x1xf32> to vector<8x8xf32>
    %64 = arith.subf %60, %63 : vector<8x8xf32>
    %65 = math.exp %64 : vector<8x8xf32>
    %cst_40 = arith.constant dense<0.000000e+00> : vector<8xf32>
    %66 = vector.multi_reduction <add>, %65, %cst_40 [1] : vector<8x8xf32> to vector<8xf32>
    %67 = vector.shape_cast %66 : vector<8xf32> to vector<8x1xf32>
    %68 = tpu.reciprocal %67 {approx = true} : vector<8x1xf32> -> vector<8x1xf32>
    %69 = vector.broadcast %68 : vector<8x1xf32> to vector<8x8xf32>
    %70 = arith.mulf %65, %69 : vector<8x8xf32>
    %71 = arith.truncf %70 : vector<8x8xf32> to vector<8x8xbf16>
    %72 = arith.truncf %51 : vector<8x8xf32> to vector<8x8xbf16>
    %cst_41 = arith.constant dense<0.000000e+00> : vector<8x8xf32>
    %73 = tpu.matmul %71, %72, %cst_41 {dimension_numbers = #tpu.dot_dimension_numbers<[1], [0], [0], [1], [0, 0, 1, 1], [], []>} : vector<8x8xbf16>, vector<8x8xbf16>, vector<8x8xf32> -> vector<8x8xf32>
    %c0_42 = arith.constant 0 : index
    %c0_43 = arith.constant 0 : index
    %c0_44 = arith.constant 0 : index
    %74 = vector.load %arg11[%c0_42, %c0_43, %c0_44] : memref<4x8x32xbf16, #tpu.memory_space<vmem>>, vector<1x8x32xbf16>
    %75 = vector.shape_cast %74 : vector<1x8x32xbf16> to vector<8x32xbf16>
    %76 = arith.truncf %73 : vector<8x8xf32> to vector<8x8xbf16>
    %cst_45 = arith.constant dense<0.000000e+00> : vector<8x32xf32>
    %77 = tpu.matmul %76, %75, %cst_45 {dimension_numbers = #tpu.dot_dimension_numbers<[1], [0], [0], [1], [0, 0, 1, 1], [], []>} : vector<8x8xbf16>, vector<8x32xbf16>, vector<8x32xf32> -> vector<8x32xf32>
    %78 = arith.addf %27, %77 : vector<8x32xf32>
    %c1 = arith.constant 1 : index
    %c0_46 = arith.constant 0 : index
    %c0_47 = arith.constant 0 : index
    %79 = vector.load %arg5[%c1, %c0_46, %c0_47] : memref<4x32x8xbf16, #tpu.memory_space<vmem>>, vector<1x32x8xbf16>
    %80 = vector.shape_cast %79 : vector<1x32x8xbf16> to vector<32x8xbf16>
    %81 = arith.truncf %26 : vector<8x32xf32> to vector<8x32xbf16>
    %cst_48 = arith.constant dense<0.000000e+00> : vector<8x8xf32>
    %82 = tpu.matmul %81, %80, %cst_48 {dimension_numbers = #tpu.dot_dimension_numbers<[1], [0], [0], [1], [0, 0, 1, 1], [], []>} : vector<8x32xbf16>, vector<32x8xbf16>, vector<8x8xf32> -> vector<8x8xf32>
    %c1_49 = arith.constant 1 : index
    %c0_50 = arith.constant 0 : index
    %c0_51 = arith.constant 0 : index
    %83 = vector.load %arg6[%c1_49, %c0_50, %c0_51] : memref<4x1x8xf32, #tpu.memory_space<vmem>>, vector<1x1x8xf32>
    %84 = vector.shape_cast %83 : vector<1x1x8xf32> to vector<1x8xf32>
    %85 = vector.broadcast %84 : vector<1x8xf32> to vector<8x8xf32>
    %86 = arith.addf %82, %85 : vector<8x8xf32>
    %c1_52 = arith.constant 1 : index
    %c0_53 = arith.constant 0 : index
    %c0_54 = arith.constant 0 : index
    %87 = vector.load %arg7[%c1_52, %c0_53, %c0_54] : memref<4x32x8xbf16, #tpu.memory_space<vmem>>, vector<1x32x8xbf16>
    %88 = vector.shape_cast %87 : vector<1x32x8xbf16> to vector<32x8xbf16>
    %89 = arith.truncf %26 : vector<8x32xf32> to vector<8x32xbf16>
    %cst_55 = arith.constant dense<0.000000e+00> : vector<8x8xf32>
    %90 = tpu.matmul %89, %88, %cst_55 {dimension_numbers = #tpu.dot_dimension_numbers<[1], [0], [0], [1], [0, 0, 1, 1], [], []>} : vector<8x32xbf16>, vector<32x8xbf16>, vector<8x8xf32> -> vector<8x8xf32>
    %c1_56 = arith.constant 1 : index
    %c0_57 = arith.constant 0 : index
    %c0_58 = arith.constant 0 : index
    %91 = vector.load %arg8[%c1_56, %c0_57, %c0_58] : memref<4x1x8xf32, #tpu.memory_space<vmem>>, vector<1x1x8xf32>
    %92 = vector.shape_cast %91 : vector<1x1x8xf32> to vector<1x8xf32>
    %93 = vector.broadcast %92 : vector<1x8xf32> to vector<8x8xf32>
    %94 = arith.addf %90, %93 : vector<8x8xf32>
    %c1_59 = arith.constant 1 : index
    %c0_60 = arith.constant 0 : index
    %c0_61 = arith.constant 0 : index
    %95 = vector.load %arg9[%c1_59, %c0_60, %c0_61] : memref<4x32x8xbf16, #tpu.memory_space<vmem>>, vector<1x32x8xbf16>
    %96 = vector.shape_cast %95 : vector<1x32x8xbf16> to vector<32x8xbf16>
    %97 = arith.truncf %26 : vector<8x32xf32> to vector<8x32xbf16>
    %cst_62 = arith.constant dense<0.000000e+00> : vector<8x8xf32>
    %98 = tpu.matmul %97, %96, %cst_62 {dimension_numbers = #tpu.dot_dimension_numbers<[1], [0], [0], [1], [0, 0, 1, 1], [], []>} : vector<8x32xbf16>, vector<32x8xbf16>, vector<8x8xf32> -> vector<8x8xf32>
    %c1_63 = arith.constant 1 : index
    %c0_64 = arith.constant 0 : index
    %c0_65 = arith.constant 0 : index
    %99 = vector.load %arg10[%c1_63, %c0_64, %c0_65] : memref<4x1x8xf32, #tpu.memory_space<vmem>>, vector<1x1x8xf32>
    %100 = vector.shape_cast %99 : vector<1x1x8xf32> to vector<1x8xf32>
    %101 = vector.broadcast %100 : vector<1x8xf32> to vector<8x8xf32>
    %102 = arith.addf %98, %101 : vector<8x8xf32>
    %103 = arith.truncf %86 : vector<8x8xf32> to vector<8x8xbf16>
    %104 = arith.truncf %94 : vector<8x8xf32> to vector<8x8xbf16>
    %cst_66 = arith.constant dense<0.000000e+00> : vector<8x8xf32>
    %105 = tpu.matmul %103, %104, %cst_66 {dimension_numbers = #tpu.dot_dimension_numbers<[1], [1], [0], [0], [0, 0, 1, 0], [], []>} : vector<8x8xbf16>, vector<8x8xbf16>, vector<8x8xf32> -> vector<8x8xf32>
    %cst_67 = arith.constant 0.353553385 : f32
    %106 = vector.broadcast %cst_67 : f32 to vector<8x8xf32>
    %107 = arith.mulf %105, %106 : vector<8x8xf32>
    %cst_68 = arith.constant 0.000000e+00 : f32
    %108 = vector.broadcast %cst_68 : f32 to vector<8x8xf32>
    %109 = arith.cmpf oeq, %3, %108 : vector<8x8xf32>
    %cst_69 = arith.constant -1.000000e+09 : f32
    %110 = vector.broadcast %cst_69 : f32 to vector<8x8xf32>
    %111 = arith.select %109, %110, %107 : vector<8x8xi1>, vector<8x8xf32>
    %cst_70 = arith.constant dense<0xFF800000> : vector<8xf32>
    %112 = vector.multi_reduction <maximumf>, %111, %cst_70 [1] : vector<8x8xf32> to vector<8xf32>
    %113 = vector.shape_cast %112 : vector<8xf32> to vector<8x1xf32>
    %114 = vector.broadcast %113 : vector<8x1xf32> to vector<8x8xf32>
    %115 = arith.subf %111, %114 : vector<8x8xf32>
    %116 = math.exp %115 : vector<8x8xf32>
    %cst_71 = arith.constant dense<0.000000e+00> : vector<8xf32>
    %117 = vector.multi_reduction <add>, %116, %cst_71 [1] : vector<8x8xf32> to vector<8xf32>
    %118 = vector.shape_cast %117 : vector<8xf32> to vector<8x1xf32>
    %119 = tpu.reciprocal %118 {approx = true} : vector<8x1xf32> -> vector<8x1xf32>
    %120 = vector.broadcast %119 : vector<8x1xf32> to vector<8x8xf32>
    %121 = arith.mulf %116, %120 : vector<8x8xf32>
    %122 = arith.truncf %121 : vector<8x8xf32> to vector<8x8xbf16>
    %123 = arith.truncf %102 : vector<8x8xf32> to vector<8x8xbf16>
    %cst_72 = arith.constant dense<0.000000e+00> : vector<8x8xf32>
    %124 = tpu.matmul %122, %123, %cst_72 {dimension_numbers = #tpu.dot_dimension_numbers<[1], [0], [0], [1], [0, 0, 1, 1], [], []>} : vector<8x8xbf16>, vector<8x8xbf16>, vector<8x8xf32> -> vector<8x8xf32>
    %c1_73 = arith.constant 1 : index
    %c0_74 = arith.constant 0 : index
    %c0_75 = arith.constant 0 : index
    %125 = vector.load %arg11[%c1_73, %c0_74, %c0_75] : memref<4x8x32xbf16, #tpu.memory_space<vmem>>, vector<1x8x32xbf16>
    %126 = vector.shape_cast %125 : vector<1x8x32xbf16> to vector<8x32xbf16>
    %127 = arith.truncf %124 : vector<8x8xf32> to vector<8x8xbf16>
    %cst_76 = arith.constant dense<0.000000e+00> : vector<8x32xf32>
    %128 = tpu.matmul %127, %126, %cst_76 {dimension_numbers = #tpu.dot_dimension_numbers<[1], [0], [0], [1], [0, 0, 1, 1], [], []>} : vector<8x8xbf16>, vector<8x32xbf16>, vector<8x32xf32> -> vector<8x32xf32>
    %129 = arith.addf %78, %128 : vector<8x32xf32>
    %c2 = arith.constant 2 : index
    %c0_77 = arith.constant 0 : index
    %c0_78 = arith.constant 0 : index
    %130 = vector.load %arg5[%c2, %c0_77, %c0_78] : memref<4x32x8xbf16, #tpu.memory_space<vmem>>, vector<1x32x8xbf16>
    %131 = vector.shape_cast %130 : vector<1x32x8xbf16> to vector<32x8xbf16>
    %132 = arith.truncf %26 : vector<8x32xf32> to vector<8x32xbf16>
    %cst_79 = arith.constant dense<0.000000e+00> : vector<8x8xf32>
    %133 = tpu.matmul %132, %131, %cst_79 {dimension_numbers = #tpu.dot_dimension_numbers<[1], [0], [0], [1], [0, 0, 1, 1], [], []>} : vector<8x32xbf16>, vector<32x8xbf16>, vector<8x8xf32> -> vector<8x8xf32>
    %c2_80 = arith.constant 2 : index
    %c0_81 = arith.constant 0 : index
    %c0_82 = arith.constant 0 : index
    %134 = vector.load %arg6[%c2_80, %c0_81, %c0_82] : memref<4x1x8xf32, #tpu.memory_space<vmem>>, vector<1x1x8xf32>
    %135 = vector.shape_cast %134 : vector<1x1x8xf32> to vector<1x8xf32>
    %136 = vector.broadcast %135 : vector<1x8xf32> to vector<8x8xf32>
    %137 = arith.addf %133, %136 : vector<8x8xf32>
    %c2_83 = arith.constant 2 : index
    %c0_84 = arith.constant 0 : index
    %c0_85 = arith.constant 0 : index
    %138 = vector.load %arg7[%c2_83, %c0_84, %c0_85] : memref<4x32x8xbf16, #tpu.memory_space<vmem>>, vector<1x32x8xbf16>
    %139 = vector.shape_cast %138 : vector<1x32x8xbf16> to vector<32x8xbf16>
    %140 = arith.truncf %26 : vector<8x32xf32> to vector<8x32xbf16>
    %cst_86 = arith.constant dense<0.000000e+00> : vector<8x8xf32>
    %141 = tpu.matmul %140, %139, %cst_86 {dimension_numbers = #tpu.dot_dimension_numbers<[1], [0], [0], [1], [0, 0, 1, 1], [], []>} : vector<8x32xbf16>, vector<32x8xbf16>, vector<8x8xf32> -> vector<8x8xf32>
    %c2_87 = arith.constant 2 : index
    %c0_88 = arith.constant 0 : index
    %c0_89 = arith.constant 0 : index
    %142 = vector.load %arg8[%c2_87, %c0_88, %c0_89] : memref<4x1x8xf32, #tpu.memory_space<vmem>>, vector<1x1x8xf32>
    %143 = vector.shape_cast %142 : vector<1x1x8xf32> to vector<1x8xf32>
    %144 = vector.broadcast %143 : vector<1x8xf32> to vector<8x8xf32>
    %145 = arith.addf %141, %144 : vector<8x8xf32>
    %c2_90 = arith.constant 2 : index
    %c0_91 = arith.constant 0 : index
    %c0_92 = arith.constant 0 : index
    %146 = vector.load %arg9[%c2_90, %c0_91, %c0_92] : memref<4x32x8xbf16, #tpu.memory_space<vmem>>, vector<1x32x8xbf16>
    %147 = vector.shape_cast %146 : vector<1x32x8xbf16> to vector<32x8xbf16>
    %148 = arith.truncf %26 : vector<8x32xf32> to vector<8x32xbf16>
    %cst_93 = arith.constant dense<0.000000e+00> : vector<8x8xf32>
    %149 = tpu.matmul %148, %147, %cst_93 {dimension_numbers = #tpu.dot_dimension_numbers<[1], [0], [0], [1], [0, 0, 1, 1], [], []>} : vector<8x32xbf16>, vector<32x8xbf16>, vector<8x8xf32> -> vector<8x8xf32>
    %c2_94 = arith.constant 2 : index
    %c0_95 = arith.constant 0 : index
    %c0_96 = arith.constant 0 : index
    %150 = vector.load %arg10[%c2_94, %c0_95, %c0_96] : memref<4x1x8xf32, #tpu.memory_space<vmem>>, vector<1x1x8xf32>
    %151 = vector.shape_cast %150 : vector<1x1x8xf32> to vector<1x8xf32>
    %152 = vector.broadcast %151 : vector<1x8xf32> to vector<8x8xf32>
    %153 = arith.addf %149, %152 : vector<8x8xf32>
    %154 = arith.truncf %137 : vector<8x8xf32> to vector<8x8xbf16>
    %155 = arith.truncf %145 : vector<8x8xf32> to vector<8x8xbf16>
    %cst_97 = arith.constant dense<0.000000e+00> : vector<8x8xf32>
    %156 = tpu.matmul %154, %155, %cst_97 {dimension_numbers = #tpu.dot_dimension_numbers<[1], [1], [0], [0], [0, 0, 1, 0], [], []>} : vector<8x8xbf16>, vector<8x8xbf16>, vector<8x8xf32> -> vector<8x8xf32>
    %cst_98 = arith.constant 0.353553385 : f32
    %157 = vector.broadcast %cst_98 : f32 to vector<8x8xf32>
    %158 = arith.mulf %156, %157 : vector<8x8xf32>
    %cst_99 = arith.constant 0.000000e+00 : f32
    %159 = vector.broadcast %cst_99 : f32 to vector<8x8xf32>
    %160 = arith.cmpf oeq, %3, %159 : vector<8x8xf32>
    %cst_100 = arith.constant -1.000000e+09 : f32
    %161 = vector.broadcast %cst_100 : f32 to vector<8x8xf32>
    %162 = arith.select %160, %161, %158 : vector<8x8xi1>, vector<8x8xf32>
    %cst_101 = arith.constant dense<0xFF800000> : vector<8xf32>
    %163 = vector.multi_reduction <maximumf>, %162, %cst_101 [1] : vector<8x8xf32> to vector<8xf32>
    %164 = vector.shape_cast %163 : vector<8xf32> to vector<8x1xf32>
    %165 = vector.broadcast %164 : vector<8x1xf32> to vector<8x8xf32>
    %166 = arith.subf %162, %165 : vector<8x8xf32>
    %167 = math.exp %166 : vector<8x8xf32>
    %cst_102 = arith.constant dense<0.000000e+00> : vector<8xf32>
    %168 = vector.multi_reduction <add>, %167, %cst_102 [1] : vector<8x8xf32> to vector<8xf32>
    %169 = vector.shape_cast %168 : vector<8xf32> to vector<8x1xf32>
    %170 = tpu.reciprocal %169 {approx = true} : vector<8x1xf32> -> vector<8x1xf32>
    %171 = vector.broadcast %170 : vector<8x1xf32> to vector<8x8xf32>
    %172 = arith.mulf %167, %171 : vector<8x8xf32>
    %173 = arith.truncf %172 : vector<8x8xf32> to vector<8x8xbf16>
    %174 = arith.truncf %153 : vector<8x8xf32> to vector<8x8xbf16>
    %cst_103 = arith.constant dense<0.000000e+00> : vector<8x8xf32>
    %175 = tpu.matmul %173, %174, %cst_103 {dimension_numbers = #tpu.dot_dimension_numbers<[1], [0], [0], [1], [0, 0, 1, 1], [], []>} : vector<8x8xbf16>, vector<8x8xbf16>, vector<8x8xf32> -> vector<8x8xf32>
    %c2_104 = arith.constant 2 : index
    %c0_105 = arith.constant 0 : index
    %c0_106 = arith.constant 0 : index
    %176 = vector.load %arg11[%c2_104, %c0_105, %c0_106] : memref<4x8x32xbf16, #tpu.memory_space<vmem>>, vector<1x8x32xbf16>
    %177 = vector.shape_cast %176 : vector<1x8x32xbf16> to vector<8x32xbf16>
    %178 = arith.truncf %175 : vector<8x8xf32> to vector<8x8xbf16>
    %cst_107 = arith.constant dense<0.000000e+00> : vector<8x32xf32>
    %179 = tpu.matmul %178, %177, %cst_107 {dimension_numbers = #tpu.dot_dimension_numbers<[1], [0], [0], [1], [0, 0, 1, 1], [], []>} : vector<8x8xbf16>, vector<8x32xbf16>, vector<8x32xf32> -> vector<8x32xf32>
    %180 = arith.addf %129, %179 : vector<8x32xf32>
    %c3 = arith.constant 3 : index
    %c0_108 = arith.constant 0 : index
    %c0_109 = arith.constant 0 : index
    %181 = vector.load %arg5[%c3, %c0_108, %c0_109] : memref<4x32x8xbf16, #tpu.memory_space<vmem>>, vector<1x32x8xbf16>
    %182 = vector.shape_cast %181 : vector<1x32x8xbf16> to vector<32x8xbf16>
    %183 = arith.truncf %26 : vector<8x32xf32> to vector<8x32xbf16>
    %cst_110 = arith.constant dense<0.000000e+00> : vector<8x8xf32>
    %184 = tpu.matmul %183, %182, %cst_110 {dimension_numbers = #tpu.dot_dimension_numbers<[1], [0], [0], [1], [0, 0, 1, 1], [], []>} : vector<8x32xbf16>, vector<32x8xbf16>, vector<8x8xf32> -> vector<8x8xf32>
    %c3_111 = arith.constant 3 : index
    %c0_112 = arith.constant 0 : index
    %c0_113 = arith.constant 0 : index
    %185 = vector.load %arg6[%c3_111, %c0_112, %c0_113] : memref<4x1x8xf32, #tpu.memory_space<vmem>>, vector<1x1x8xf32>
    %186 = vector.shape_cast %185 : vector<1x1x8xf32> to vector<1x8xf32>
    %187 = vector.broadcast %186 : vector<1x8xf32> to vector<8x8xf32>
    %188 = arith.addf %184, %187 : vector<8x8xf32>
    %c3_114 = arith.constant 3 : index
    %c0_115 = arith.constant 0 : index
    %c0_116 = arith.constant 0 : index
    %189 = vector.load %arg7[%c3_114, %c0_115, %c0_116] : memref<4x32x8xbf16, #tpu.memory_space<vmem>>, vector<1x32x8xbf16>
    %190 = vector.shape_cast %189 : vector<1x32x8xbf16> to vector<32x8xbf16>
    %191 = arith.truncf %26 : vector<8x32xf32> to vector<8x32xbf16>
    %cst_117 = arith.constant dense<0.000000e+00> : vector<8x8xf32>
    %192 = tpu.matmul %191, %190, %cst_117 {dimension_numbers = #tpu.dot_dimension_numbers<[1], [0], [0], [1], [0, 0, 1, 1], [], []>} : vector<8x32xbf16>, vector<32x8xbf16>, vector<8x8xf32> -> vector<8x8xf32>
    %c3_118 = arith.constant 3 : index
    %c0_119 = arith.constant 0 : index
    %c0_120 = arith.constant 0 : index
    %193 = vector.load %arg8[%c3_118, %c0_119, %c0_120] : memref<4x1x8xf32, #tpu.memory_space<vmem>>, vector<1x1x8xf32>
    %194 = vector.shape_cast %193 : vector<1x1x8xf32> to vector<1x8xf32>
    %195 = vector.broadcast %194 : vector<1x8xf32> to vector<8x8xf32>
    %196 = arith.addf %192, %195 : vector<8x8xf32>
    %c3_121 = arith.constant 3 : index
    %c0_122 = arith.constant 0 : index
    %c0_123 = arith.constant 0 : index
    %197 = vector.load %arg9[%c3_121, %c0_122, %c0_123] : memref<4x32x8xbf16, #tpu.memory_space<vmem>>, vector<1x32x8xbf16>
    %198 = vector.shape_cast %197 : vector<1x32x8xbf16> to vector<32x8xbf16>
    %199 = arith.truncf %26 : vector<8x32xf32> to vector<8x32xbf16>
    %cst_124 = arith.constant dense<0.000000e+00> : vector<8x8xf32>
    %200 = tpu.matmul %199, %198, %cst_124 {dimension_numbers = #tpu.dot_dimension_numbers<[1], [0], [0], [1], [0, 0, 1, 1], [], []>} : vector<8x32xbf16>, vector<32x8xbf16>, vector<8x8xf32> -> vector<8x8xf32>
    %c3_125 = arith.constant 3 : index
    %c0_126 = arith.constant 0 : index
    %c0_127 = arith.constant 0 : index
    %201 = vector.load %arg10[%c3_125, %c0_126, %c0_127] : memref<4x1x8xf32, #tpu.memory_space<vmem>>, vector<1x1x8xf32>
    %202 = vector.shape_cast %201 : vector<1x1x8xf32> to vector<1x8xf32>
    %203 = vector.broadcast %202 : vector<1x8xf32> to vector<8x8xf32>
    %204 = arith.addf %200, %203 : vector<8x8xf32>
    %205 = arith.truncf %188 : vector<8x8xf32> to vector<8x8xbf16>
    %206 = arith.truncf %196 : vector<8x8xf32> to vector<8x8xbf16>
    %cst_128 = arith.constant dense<0.000000e+00> : vector<8x8xf32>
    %207 = tpu.matmul %205, %206, %cst_128 {dimension_numbers = #tpu.dot_dimension_numbers<[1], [1], [0], [0], [0, 0, 1, 0], [], []>} : vector<8x8xbf16>, vector<8x8xbf16>, vector<8x8xf32> -> vector<8x8xf32>
    %cst_129 = arith.constant 0.353553385 : f32
    %208 = vector.broadcast %cst_129 : f32 to vector<8x8xf32>
    %209 = arith.mulf %207, %208 : vector<8x8xf32>
    %cst_130 = arith.constant 0.000000e+00 : f32
    %210 = vector.broadcast %cst_130 : f32 to vector<8x8xf32>
    %211 = arith.cmpf oeq, %3, %210 : vector<8x8xf32>
    %cst_131 = arith.constant -1.000000e+09 : f32
    %212 = vector.broadcast %cst_131 : f32 to vector<8x8xf32>
    %213 = arith.select %211, %212, %209 : vector<8x8xi1>, vector<8x8xf32>
    %cst_132 = arith.constant dense<0xFF800000> : vector<8xf32>
    %214 = vector.multi_reduction <maximumf>, %213, %cst_132 [1] : vector<8x8xf32> to vector<8xf32>
    %215 = vector.shape_cast %214 : vector<8xf32> to vector<8x1xf32>
    %216 = vector.broadcast %215 : vector<8x1xf32> to vector<8x8xf32>
    %217 = arith.subf %213, %216 : vector<8x8xf32>
    %218 = math.exp %217 : vector<8x8xf32>
    %cst_133 = arith.constant dense<0.000000e+00> : vector<8xf32>
    %219 = vector.multi_reduction <add>, %218, %cst_133 [1] : vector<8x8xf32> to vector<8xf32>
    %220 = vector.shape_cast %219 : vector<8xf32> to vector<8x1xf32>
    %221 = tpu.reciprocal %220 {approx = true} : vector<8x1xf32> -> vector<8x1xf32>
    %222 = vector.broadcast %221 : vector<8x1xf32> to vector<8x8xf32>
    %223 = arith.mulf %218, %222 : vector<8x8xf32>
    %224 = arith.truncf %223 : vector<8x8xf32> to vector<8x8xbf16>
    %225 = arith.truncf %204 : vector<8x8xf32> to vector<8x8xbf16>
    %cst_134 = arith.constant dense<0.000000e+00> : vector<8x8xf32>
    %226 = tpu.matmul %224, %225, %cst_134 {dimension_numbers = #tpu.dot_dimension_numbers<[1], [0], [0], [1], [0, 0, 1, 1], [], []>} : vector<8x8xbf16>, vector<8x8xbf16>, vector<8x8xf32> -> vector<8x8xf32>
    %c3_135 = arith.constant 3 : index
    %c0_136 = arith.constant 0 : index
    %c0_137 = arith.constant 0 : index
    %227 = vector.load %arg11[%c3_135, %c0_136, %c0_137] : memref<4x8x32xbf16, #tpu.memory_space<vmem>>, vector<1x8x32xbf16>
    %228 = vector.shape_cast %227 : vector<1x8x32xbf16> to vector<8x32xbf16>
    %229 = arith.truncf %226 : vector<8x8xf32> to vector<8x8xbf16>
    %cst_138 = arith.constant dense<0.000000e+00> : vector<8x32xf32>
    %230 = tpu.matmul %229, %228, %cst_138 {dimension_numbers = #tpu.dot_dimension_numbers<[1], [0], [0], [1], [0, 0, 1, 1], [], []>} : vector<8x8xbf16>, vector<8x32xbf16>, vector<8x32xf32> -> vector<8x32xf32>
    %231 = arith.addf %180, %230 : vector<8x32xf32>
    %232 = arith.addf %1, %231 : vector<8x32xf32>
    %c0_139 = arith.constant 0 : index
    %c0_140 = arith.constant 0 : index
    %233 = vector.load %arg12[%c0_139, %c0_140] : memref<1x32xf32, #tpu.memory_space<vmem>>, vector<1x32xf32>
    %234 = vector.broadcast %233 : vector<1x32xf32> to vector<8x32xf32>
    %235 = arith.addf %232, %234 : vector<8x32xf32>
    %c0_141 = arith.constant 0 : index
    %c0_142 = arith.constant 0 : index
    %c0_143 = arith.constant 0 : index
    %236 = vector.load %arg13[%c0_141, %c0_142, %c0_143] : memref<1x8x32xf32, #tpu.memory_space<vmem>>, vector<1x8x32xf32>
    %237 = vector.shape_cast %236 : vector<1x8x32xf32> to vector<8x32xf32>
    %238 = vector.shape_cast %235 : vector<8x32xf32> to vector<1x8x32xf32>
    tpu.vector_store %arg13[%c0_141, %c0_142, %c0_143], %238 {strides = array<i32>} : memref<1x8x32xf32, #tpu.memory_space<vmem>>, vector<1x8x32xf32>,
    return
  }
  func.func @transform_0(%arg0: i32) -> (i32, i32, i32) {
    %c0_i32 = arith.constant 0 : i32
    %c0_i32_0 = arith.constant 0 : i32
    %c0_i32_1 = arith.constant 0 : i32
    return %arg0, %c0_i32, %c0_i32_0 : i32, i32, i32
  }
  func.func @transform_1(%arg0: i32) -> (i32, i32, i32) {
    %c0_i32 = arith.constant 0 : i32
    %c0_i32_0 = arith.constant 0 : i32
    %c0_i32_1 = arith.constant 0 : i32
    return %arg0, %c0_i32, %c0_i32_0 : i32, i32, i32
  }
  func.func @transform_2(%arg0: i32) -> (i32, i32) {
    %c0_i32 = arith.constant 0 : i32
    %c0_i32_0 = arith.constant 0 : i32
    %c0_i32_1 = arith.constant 0 : i32
    return %c0_i32, %c0_i32_0 : i32, i32
  }
  func.func @transform_3(%arg0: i32) -> (i32, i32) {
    %c0_i32 = arith.constant 0 : i32
    %c0_i32_0 = arith.constant 0 : i32
    %c0_i32_1 = arith.constant 0 : i32
    return %c0_i32, %c0_i32_0 : i32, i32
  }
  func.func @transform_4(%arg0: i32) -> (i32, i32, i32) {
    %c0_i32 = arith.constant 0 : i32
    %c0_i32_0 = arith.constant 0 : i32
    %c0_i32_1 = arith.constant 0 : i32
    %c0_i32_2 = arith.constant 0 : i32
    return %c0_i32, %c0_i32_0, %c0_i32_1 : i32, i32, i32
  }
  func.func @transform_5(%arg0: i32) -> (i32, i32, i32) {
    %c0_i32 = arith.constant 0 : i32
    %c0_i32_0 = arith.constant 0 : i32
    %c0_i32_1 = arith.constant 0 : i32
    %c0_i32_2 = arith.constant 0 : i32
    return %c0_i32, %c0_i32_0, %c0_i32_1 : i32, i32, i32
  }
  func.func @transform_6(%arg0: i32) -> (i32, i32, i32) {
    %c0_i32 = arith.constant 0 : i32
    %c0_i32_0 = arith.constant 0 : i32
    %c0_i32_1 = arith.constant 0 : i32
    %c0_i32_2 = arith.constant 0 : i32
    return %c0_i32, %c0_i32_0, %c0_i32_1 : i32, i32, i32
  }
  func.func @transform_7(%arg0: i32) -> (i32, i32, i32) {
    %c0_i32 = arith.constant 0 : i32
    %c0_i32_0 = arith.constant 0 : i32
    %c0_i32_1 = arith.constant 0 : i32
    %c0_i32_2 = arith.constant 0 : i32
    return %c0_i32, %c0_i32_0, %c0_i32_1 : i32, i32, i32
  }
  func.func @transform_8(%arg0: i32) -> (i32, i32, i32) {
    %c0_i32 = arith.constant 0 : i32
    %c0_i32_0 = arith.constant 0 : i32
    %c0_i32_1 = arith.constant 0 : i32
    %c0_i32_2 = arith.constant 0 : i32
    return %c0_i32, %c0_i32_0, %c0_i32_1 : i32, i32, i32
  }
  func.func @transform_9(%arg0: i32) -> (i32, i32, i32) {
    %c0_i32 = arith.constant 0 : i32
    %c0_i32_0 = arith.constant 0 : i32
    %c0_i32_1 = arith.constant 0 : i32
    %c0_i32_2 = arith.constant 0 : i32
    return %c0_i32, %c0_i32_0, %c0_i32_1 : i32, i32, i32
  }
  func.func @transform_10(%arg0: i32) -> (i32, i32, i32) {
    %c0_i32 = arith.constant 0 : i32
    %c0_i32_0 = arith.constant 0 : i32
    %c0_i32_1 = arith.constant 0 : i32
    %c0_i32_2 = arith.constant 0 : i32
    return %c0_i32, %c0_i32_0, %c0_i32_1 : i32, i32, i32
  }
  func.func @transform_11(%arg0: i32) -> (i32, i32) {
    %c0_i32 = arith.constant 0 : i32
    %c0_i32_0 = arith.constant 0 : i32
    %c0_i32_1 = arith.constant 0 : i32
    return %c0_i32, %c0_i32_0 : i32, i32
  }
  func.func @transform_12(%arg0: i32) -> (i32, i32, i32) {
    %c0_i32 = arith.constant 0 : i32
    %c0_i32_0 = arith.constant 0 : i32
    %c0_i32_1 = arith.constant 0 : i32
    return %arg0, %c0_i32, %c0_i32_0 : i32, i32, i32
  }
}

</mosaic_0001>

<bundles_post_ra>
// kernel: tpu_custom_call.1
= control target key start
LH: loop header
LB: loop body
LE: loop exit
PB: predicated region body
PF: predicated region fallthrough
CT: control target
= control target key end

     0   :  { %s2946_s0 = inlined_call_operand.vmem [shape: f32[2,8,32], index: 0, kind: input, shape index: {}]   ;;  %s2947_s1 = inlined_call_operand.vmem [shape: f32[2,8,8], index: 1, kind: input, shape index: {}]   ;;  %s2948_s2 = inlined_call_operand.vmem [shape: f32[1,32], index: 2, kind: input, shape index: {}]   ;;  %s2949_s3 = inlined_call_operand.vmem [shape: f32[1,32], index: 3, kind: input, shape index: {}]   ;;  %s2950_s4 = inlined_call_operand.vmem [shape: bf16[4,32,8], index: 4, kind: input, shape index: {}]   ;;  %s2951_s5 = inlined_call_operand.vmem [shape: f32[4,1,8], index: 5, kind: input, shape index: {}]   ;;  %s2952_s6 = inlined_call_operand.vmem [shape: bf16[4,32,8], index: 6, kind: input, shape index: {}]   ;;  %s2953_s7 = inlined_call_operand.vmem [shape: f32[4,1,8], index: 7, kind: input, shape index: {}]   ;;  %s2954_s8 = inlined_call_operand.vmem [shape: bf16[4,32,8], index: 8, kind: input, shape index: {}]   ;;  %s2955_s9 = inlined_call_operand.vmem [shape: f32[4,1,8], index: 9, kind: input, shape index: {}]   ;;  %s2956_s10 = inlined_call_operand.vmem [shape: bf16[4,8,32], index: 10, kind: input, shape index: {}]   ;;  %s2957_s11 = inlined_call_operand.vmem [shape: f32[1,32], index: 11, kind: input, shape index: {}]   ;;  %s2958_s12 = inlined_call_operand.hbm [shape: f32[2,8,32], index: 12, kind: output, shape index: {}]  }
   0x1   :  { %2959 = sst [smem:[#allocation5_spill]] %s2946_s0 }
   0x2   :  { %2960 = sst [smem:[#allocation6_spill]] %s2947_s1 }
   0x3   :  { %17 = vsyncpa [#allocation3], 0 }
   0x4   :  { %19 = vsyncpa [#allocation3 + $0x1], 0  ;;  %s2543_s21 = smov 0   ;;  %s2545_s22 = smov 0  }
   0x5   :  { %s2547_s23 = smov 0   ;;  %s2549_s24 = smov 0  }
   0x6 LB: > { %s2564_s25 = sadd.s32 4294967295, %s2473_s24   ;;  %s1976_s26 = sadd.s32 4294967294, %s2473_s24   ;;  %s2473_s24 = sphi %s2549_s24, %s2968_s24   ;;  %s2469_s23 = sphi %s2547_s23, %s2967_s23   ;;  %s2465_s22 = sphi %s2545_s22, %s2966_s22   ;;  %s2461_s21 = sphi %s2543_s21, %s2965_s21  }
   0x7   : > { %s2568_s27 = sadd.s32 1, %s2473_s24   ;;  %s294_s28 = sadd.s32 1, %s2469_s23 }
   0x8   : > { %s291_s29 = ssub.s32 %s2473_s24, %s2568_s27  ;;  %p304_p0 = scmp.ne.s32.totalorder %s2469_s23, %s2465_s22 }
   0x9   : > { %p292_p1 = scmp.eq.s32.totalorder %s291_s29, 0  ;;  %p305_p2 = scmp.eq.s32.totalorder %s2564_s25, 1 }
   0xa   : > { %p310_p3 = scmp.ne.s32.totalorder %s2465_s22, %s2461_s21  ;;  %p311_p4 = scmp.eq.s32.totalorder %s1976_s26, 1 }
   0xb   : > { %s2579_s30 = scalar_select %p292_p1, %s2469_s23, %s294_s28  }
   0xc   : > { %p2581_p5 = por %p305_p2, %p304_p0  ;;  %p2585_p6 = por %p311_p4, %p310_p3 }
   0xd   : > { %p1979_p7 = scmp.ge.s32.totalorder %s2473_s24, 1  ;;  %p373_p8 = scmp.lt.s32.totalorder %s2473_s24, 3 }
   0xf   : > { %p374_p9 = pnand %p1979_p7, %p373_p8 }
  0x10   : > { %p418_p10 = scmp.lt.s32.totalorder (!%p374_p9), %s2564_s25, 1  ;;  %vm431_vm0 = vcmask (!%p374_p9), 261120   ;;  %s2963_s0 = sld [smem:[#allocation5_spill]] (!%p374_p9)  ;;  %v2367_v7 = vld [vmem:[%s2950_s4] sm:$0xff] (!%p374_p9)   ;;  %v2475_v9 = vmov (!%p374_p9), 0.0   ;;  %v2369_v10 = vld [vmem:[%s2950_s4 + $0x8] sm:$0xff] (!%p374_p9)  }
  0x11   : > { %377 = sbr.rel (%p374_p9) target bundleno = 4267 (0x10ab), region = 68  ;;  %v2368_v8 = vld [vmem:[%s2952_s6] sm:$0xff] (!%p374_p9)   ;;  %2158 = vmatprep.subr.bf16.mxu0 (!%p374_p9), %v2475_v9  ;;  %2166 = vmatprep.subr.bf16.mxu1 (!%p374_p9), %v2475_v9  ;;  %v2370_v11 = vld [vmem:[%s2952_s6 + $0x8] sm:$0xff] (!%p374_p9)   ;;  %vm2476_vm1 = vmmov (!%p374_p9), 0   ;;  %vm662_vm4 = vcmask (!%p374_p9), 64512   ;;  %vm728_vm5 = vcmask (!%p374_p9), 1043456  }
  0x12   : > { %2159 = vmatpush3.bf16.msra.mxu0 (!%p374_p9), %v2367_v7  ;;  %2167 = vmatpush3.bf16.msra.mxu1 (!%p374_p9), %v2368_v8  ;;  %v1983_v20 = vld [vmem:[%s2948_s2] ss:$0 sm:$0xff] (!%p374_p9)  ;;  %v2372_v28 = vld [vmem:[%s2954_s8 + $0x8] sm:$0xff] (!%p374_p9)   ;;  %v2373_v48 = vld [vmem:[%s2950_s4 + $0x10] sm:$0xff] (!%p374_p9)   ;;  %s2964_s1 = sld [smem:[#allocation6_spill]] (!%p374_p9)  ;;  %s2095_s20 = sshll.u32 (!%p374_p9), %s2564_s25, 7 }
  0x13   : > { %2160 = vmatprep.subr.bf16.mxu0 (!%p374_p9), %v2475_v9  ;;  %2168 = vmatprep.subr.bf16.mxu1 (!%p374_p9), %v2475_v9  ;;  %v1984_v23 = vld [vmem:[%s2949_s3] ss:$0 sm:$0xff] (!%p374_p9)  ;;  %v2374_v53 = vld [vmem:[%s2950_s4 + $0x18] sm:$0xff] (!%p374_p9)   ;;  %v2375_v54 = vld [vmem:[%s2954_s8 + $0x10] sm:$0xff] (!%p374_p9)  }
  0x14   : > { %2162 = vmatprep.mubr.msk.bf16.mxu0 (!%p374_p9), %vm2476_vm1, %v2475_v9  ;;  %2170 = vmatprep.mubr.msk.bf16.mxu1 (!%p374_p9), %vm2476_vm1, %v2475_v9  ;;  %v2371_v26 = vld [vmem:[%s2954_s8] sm:$0xff] (!%p374_p9)   ;;  %v2376_v55 = vld [vmem:[%s2954_s8 + $0x18] sm:$0xff] (!%p374_p9)  }
  0x15   : > { %v1989_v29 = vld [vmem:[%s2953_s7] ss:$0 sm:$0xff] (!%p374_p9) }
  0x16   : > { %2161 = vmatpush3.bf16.msra.mxu0 (!%p374_p9), %v2369_v10  ;;  %2169 = vmatpush3.bf16.msra.mxu1 (!%p374_p9), %v2370_v11  ;;  %v1985_v40 = vld [vmem:[%s2951_s5] ss:$0 sm:$0xff] (!%p374_p9) }
  0x17   : > { %2174 = vmatprep.subr.bf16.mxu0 (!%p374_p9), %v2475_v9  ;;  %2182 = vmatprep.subr.bf16.mxu1 (!%p374_p9), %v2475_v9  ;;  %v1993_v42 = vld [vmem:[%s2955_s9] ss:$0 sm:$0xff] (!%p374_p9) }
  0x18   : > { %s2593_s15 = scalar_select %p418_p10, %s2564_s25, 1 }
  0x1a   : > { %s1981_s16 = sshll.u32 %s2593_s15, 3  ;;  %s415_s15 = sand.u32 1, %s2465_s22  }
  0x1b   : > { %s421_s19 = scalar_lea.vmem %s2963_s0, %s1981_s16  ;;  %s425_s17 = scalar_lea.vmem %s2964_s1, %s1981_s16 }
  0x1c   : > { %v2601_v0 = vld [vmem:[%s421_s19] sm:$0xff]  ;;  %s1980_s16 = sshll.u32 %s415_s15, 3  ;;  %s2903_s0 = scalar_lea.hbm %s2958_s12, %s2095_s20 }
  0x1d   : > { %v432_v1 = vsel %vm431_vm0, %v2601_v0, 0.0  ;;  %v2702_v56 = vld [vmem:[%s425_s17] sm:$0xff]  ;;  %s417_s26 = scalar_lea.vmem [#allocation2], %s1980_s16  ;;  %s1892_s18 = scalar_lea.sflag [#allocation3], %s415_s15 }
  0x1e   : > { %433 = vadd.xlane.f32.xlu0 %v432_v1  ;;  %vm710_vm6 = vcmp.eq.f32.partialorder %v2702_v56, 0.0  ;;  %s1905_s28 = sshll.u32 %s417_s26, 4  ;;  %s2477_s16 = smov [#allocation2]   ;;  %s2905_s28 = int_to_ptr.vmem [resolvable:$true] %s1905_s28 }
  0x1f   : > { %s2411_s25 = scalar_lea.vmem %s2905_s28, 128  ;;  %s2415_s19 = sshll.u32 %s2477_s16, 4  ;;  %s2416_s19 = int_to_ptr.vmem [resolvable:$false] %s2415_s19 }
  0x20   : > { %p2412_p11 = scmp.ne.s32.totalorder %s2905_s28, %s2411_s25  ;;  %s2417_s1 = scalar_lea.vmem %s2416_s19, 256 }
  0x21   : > { %p2418_p0 = scmp.lt.s32.totalorder %s2905_s28, %s2416_s19  ;;  %p2419_p1 = scmp.lt.s32.totalorder %s2417_s1, %s2411_s25 }
  0x22   : > { %p2413_p12 = pnand %p2412_p11, %p2581_p5 }
  0x23   : > { %p2420_p2 = por %p2419_p1, %p2418_p0 }
  0x24   : > { %p2414_p13 = pneg %p2413_p12 }
  0x26   : > { %p2421_p3 = pnand %p2420_p2, %p2414_p13 }
  0xab   : > { %v434_v2 = vpop.xlane.xlu0 %433 }
  0xac   : > { %v436_v3 = vmul.f32 0.03125, %v434_v2 }
  0xae   : > { %v437_v4 = vsub.f32 %v2601_v0, %v436_v3 }
  0xb0   : > { %v438_v5 = vmul.f32 %v437_v4, %v437_v4  ;;  %v458_v21 = vmul.f32 %v1983_v20, %v437_v4 }
  0xb2   : > { %v439_v6 = vsel %vm431_vm0, %v438_v5, 0.0  ;;  %v2022_v5 = vld [vmem:[%s2955_s9 + $0x1] ss:$0 sm:$0xff] }
  0xb3   : > { %440 = vadd.xlane.f32.xlu0 %v439_v6 }
 0x140   : > { %v441_v12 = vpop.xlane.xlu0 %440 }
 0x141   : > { %v442_v13 = vmul.f32 0.032258064, %v441_v12 }
 0x143   : > { %2391 = vrsqrt.f32 %v442_v13  ;;  %vm445_vm2 = vcmp.eq.f32.partialorder %v442_v13, inf  ;;  %v448_v16 = vand.u32 2147483648, %v442_v13  ;;  %vm447_vm3 = vcmp.eq.f32.partialorder %v442_v13, 0.0 }
 0x14d   : > { %v2392_v14 = vpop.eup %2391 }
 0x14e   : > { %v444_v15 = vmul.f32 %v2392_v14, %v442_v13 }
 0x150   : > { %v446_v17 = vsel %vm445_vm2, %v442_v13, %v444_v15 }
 0x151   : > { %v449_v18 = vsel %vm447_vm3, %v448_v16, %v446_v17 }
 0x152   : > { %v450_v19 = vadd.f32 1e-16, %v449_v18 }
 0x154   : > { %2393 = vrcp.f32 %v450_v19 }
 0x15e   : > { %v2394_v22 = vpop.eup %2393 }
 0x15f   : > { %v459_v24 = vmul.f32 %v2394_v22, %v458_v21  ;;  %v2377_v22 = vld [vmem:[%s2952_s6 + $0x10] sm:$0xff]  }
 0x161   : > { %v466_v25 = vadd.f32 %v1984_v23, %v459_v24  ;;  %v2378_v24 = vld [vmem:[%s2952_s6 + $0x18] sm:$0xff]  }
 0x163   : > { %v2638_v27 = vpack.c.bf16 %v466_v25, %v466_v25 }
 0x165   : > { %2163 = vmatmul.mubr.msk.bf16.vlgmr.msra.gmra.mrb[0].mxu0 %vm431_vm0, %v2638_v27  ;;  %2171 = vmatmul.mubr.msk.bf16.vlgmr.msra.gmra.mrb[0].mxu1 %vm431_vm0, %v2638_v27 }
 0x166   : > { %2175 = vmatpush3.bf16.msra.mxu0 %v2371_v26  ;;  %2178 = vmatprep.mubr.msk.bf16.mxu0 %vm2476_vm1, %v2475_v9 }
 0x167   : > { %2176 = vmatprep.subr.bf16.mxu0 %v2475_v9  ;;  %2184 = vmatprep.mubr.msk.bf16.mxu1 %vm2476_vm1, %v2475_v9 }
 0x16a   : > { %2177 = vmatpush3.bf16.msra.mxu0 %v2372_v28 }
 0x16b   : > { %2188 = vmatprep.subr.bf16.mxu0 %v2475_v9 }
 0x16d   : > { %2179 = vmatmul.mubr.msk.bf16.vlgmr.msra.gmra.mrb[4].mxu0 %vm431_vm0, %v2638_v27 }
 0x16e   : > { %2190 = vmatprep.mubr.msk.bf16.mxu0 %vm2476_vm1, %v2475_v9 }
 0x238   : > { %v528_v30 = vpop.f32.mrb[0].mxu0  ;;  %v591_v31 = vpop.f32.mrb[0].mxu1 }
 0x239   : > { %v592_v32 = vadd.f32 %v1989_v29, %v591_v31  ;;  %v2164_v33 = vpop.f32.mrb[1].mxu0  ;;  %v2172_v34 = vpop.f32.mrb[1].mxu1  ;;  %v529_v43 = vadd.f32 %v1985_v40, %v528_v30  ;;  %v2013_v30 = vld [vmem:[%s2953_s7 + $0x1] ss:$0 sm:$0xff] }
 0x23a   : > { %v531_v35 = vpop.f32.mrb[2].mxu0  ;;  %v594_v36 = vpop.f32.mrb[2].mxu1 }
 0x23b   : > { %v661_v37 = vpack.c.bf16 %v592_v32, %v592_v32  ;;  %v2165_v38 = vpop.f32.mrb[3].mxu0  ;;  %v2173_v39 = vpop.f32.mrb[3].mxu1  ;;  %v660_v49 = vpack.c.bf16 %v529_v43, %v529_v43 }
 0x23d   : > { %v667_v41 = vsel %vm662_vm4, %v661_v37, 0  ;;  %v2004_v37 = vld [vmem:[%s2951_s5 + $0x1] ss:$0 sm:$0xff] }
 0x23e   : > { %2183 = vmatpush3.bf16.xpose.msra.mxu1 %v667_v41 }
 0x23f   : > { %2194 = vmatprep.subr.bf16.mxu1 %v2475_v9 }
 0x240   : > { %v654_v44 = vpop.f32.mrb[4].mxu0 }
 0x241   : > { %v655_v45 = vadd.f32 %v1993_v42, %v654_v44  ;;  %v2180_v46 = vpop.f32.mrb[5].mxu0 }
 0x242   : > { %v657_v47 = vpop.f32.mrb[6].mxu0 }
 0x243   : > { %v724_v50 = vpack.c.bf16 %v655_v45, %v655_v45  ;;  %v2181_v51 = vpop.f32.mrb[7].mxu0 }
 0x245   : > { %v730_v52 = vsel %vm728_vm5, %v724_v50, 0  ;;  %2185 = vmatmul.mubr.msk.bf16.vlgmr.msra.gmra.mrb[4].mxu1 %vm662_vm4, %v660_v49 }
 0x246   : > { %2189 = vmatpush3.bf16.msra.mxu0 %v730_v52  ;;  %2195 = vmatpush3.bf16.msra.mxu1 %v2373_v48 }
 0x247   : > { %2196 = vmatprep.subr.bf16.mxu1 %v2475_v9  ;;  %2198 = vmatprep.mubr.msk.bf16.mxu1 %vm2476_vm1, %v2475_v9 }
 0x248   : > { %2202 = vmatprep.subr.bf16.mxu0 %v2475_v9 }
 0x24a   : > { %2197 = vmatpush3.bf16.msra.mxu1 %v2374_v53  ;;  %v2028_v53 = vld [vmem:[%s2956_s10 + $0x4] sm:$0xf] }
 0x24b   : > { %2210 = vmatprep.subr.bf16.mxu1 %v2475_v9 }
 0x24d   : > { %2199 = vmatmul.mubr.msk.bf16.vlgmr.msra.gmra.mrb[8].mxu1 %vm431_vm0, %v2638_v27 }
 0x24e   : > { %2211 = vmatpush3.bf16.msra.mxu1 %v2375_v54  ;;  %2214 = vmatprep.mubr.msk.bf16.mxu1 %vm2476_vm1, %v2475_v9  ;;  %v1085_v54 = vsel %vm728_vm5, %v2028_v53, 0 }
 0x24f   : > { %2212 = vmatprep.subr.bf16.mxu1 %v2475_v9 }
 0x252   : > { %2213 = vmatpush3.bf16.msra.mxu1 %v2376_v55 }
 0x253   : > { %2224 = vmatprep.subr.bf16.mxu1 %v2475_v9 }
 0x255   : > { %2215 = vmatmul.mubr.msk.bf16.vlgmr.msra.gmra.mrb[12].mxu1 %vm431_vm0, %v2638_v27 }
 0x256   : > { %2226 = vmatprep.mubr.msk.bf16.mxu1 %vm2476_vm1, %v2475_v9 }
 0x318   : > { %v703_v57 = vpop.f32.mrb[4].mxu1 }
 0x319   : > { %v709_v58 = vmul.f32 0.35355338, %v703_v57  ;;  %v2186_v59 = vpop.f32.mrb[5].mxu1 }
 0x31a   : > { %v706_v60 = vpop.f32.mrb[6].mxu1 }
 0x31b   : > { %v2187_v61 = vpop.f32.mrb[7].mxu1  ;;  %v711_v62 = vsel %vm710_vm6, -1e+09, %v709_v58  ;;  %v772_v58 = vld [vmem:[%s2956_s10] sm:$0xf] }
 0x31c   : > { %v712_v63 = vsel %vm662_vm4, %v711_v62, -inf  ;;  %v1131_v61 = vsel %vm728_vm5, %v772_v58, 0  ;;  %v2060_v58 = vld [vmem:[%s2956_s10 + $0x8] sm:$0xf] }
 0x31d   : > { %713 = vmax.xlane.f32.xlu1 %v712_v63 }
 0x320   : > { %v833_v1 = vpop.f32.mrb[8].mxu1 }
 0x321   : > { %v2200_v2 = vpop.f32.mrb[9].mxu1  ;;  %v834_v39 = vadd.f32 %v2004_v37, %v833_v1  ;;  %v2380_v1 = vld [vmem:[%s2952_s6 + $0x28] sm:$0xff]   ;;  %v2054_v37 = vld [vmem:[%s2955_s9 + $0x2] ss:$0 sm:$0xff] }
 0x322   : > { %v836_v3 = vpop.f32.mrb[10].mxu1 }
 0x323   : > { %v2201_v4 = vpop.f32.mrb[11].mxu1  ;;  %v969_v40 = vpack.c.bf16 %v834_v39, %v834_v39  ;;  %v2381_v3 = vld [vmem:[%s2950_s4 + $0x20] sm:$0xff]  }
 0x328   : > { %v963_v6 = vpop.f32.mrb[12].mxu1 }
 0x329   : > { %v964_v7 = vadd.f32 %v2022_v5, %v963_v6  ;;  %v2216_v8 = vpop.f32.mrb[13].mxu1 }
 0x32a   : > { %v966_v10 = vpop.f32.mrb[14].mxu1  ;;  %v2382_v8 = vld [vmem:[%s2950_s4 + $0x28] sm:$0xff]  }
 0x32b   : > { %v1031_v11 = vpack.c.bf16 %v964_v7, %v964_v7  ;;  %v2217_v12 = vpop.f32.mrb[15].mxu1 }
 0x32d   : > { %v1036_v13 = vsel %vm728_vm5, %v1031_v11, 0  ;;  %v2383_v11 = vld [vmem:[%s2954_s8 + $0x20] sm:$0xff]  }
 0x32e   : > { %2225 = vmatpush3.bf16.msra.mxu1 %v1036_v13 }
 0x32f   : > { %2236 = vmatprep.subr.bf16.mxu1 %v2475_v9 }
 0x3aa   : > { %v714_v14 = vpop.xlane.xlu1 %713 }
 0x3ab   : > { %v715_v15 = vsub.f32 %v711_v62, %v714_v14  ;;  %v2379_v62 = vld [vmem:[%s2952_s6 + $0x20] sm:$0xff]  }
 0x3ad   : > { %v716_v16 = vmul.f32 1.442695, %v715_v15  ;;  %v2384_v15 = vld [vmem:[%s2954_s8 + $0x28] sm:$0xff]  }
 0x3af   : > { %2395 = vpow2.f32 %v716_v16  ;;  %v2045_v16 = vld [vmem:[%s2953_s7 + $0x2] ss:$0 sm:$0xff] }
 0x3b9   : > { %v2396_v17 = vpop.eup %2395 }
 0x3ba   : > { %v718_v18 = vsel %vm662_vm4, %v2396_v17, 0.0 }
 0x3bb   : > { %719 = vadd.xlane.f32.xlu1 %v718_v18 }
 0x448   : > { %v720_v19 = vpop.xlane.xlu1 %719 }
 0x449   : > { %2397 = vrcp.f32 %v720_v19 }
 0x453   : > { %v2398_v20 = vpop.eup %2397 }
 0x454   : > { %v722_v21 = vmul.f32 %v2398_v20, %v2396_v17 }
 0x456   : > { %v723_v23 = vpack.c.bf16 %v722_v21, %v722_v21 }
 0x458   : > { %2191 = vmatmul.mubr.msk.bf16.vlgmr.msra.gmra.mrb[8].mxu0 %vm662_vm4, %v723_v23 }
 0x459   : > { %2203 = vmatpush3.bf16.msra.mxu0 %v2377_v22  ;;  %2206 = vmatprep.mubr.msk.bf16.mxu0 %vm2476_vm1, %v2475_v9 }
 0x45a   : > { %2204 = vmatprep.subr.bf16.mxu0 %v2475_v9 }
 0x45d   : > { %2205 = vmatpush3.bf16.msra.mxu0 %v2378_v24 }
 0x45e   : > { %2218 = vmatprep.subr.bf16.mxu0 %v2475_v9 }
 0x460   : > { %2207 = vmatmul.mubr.msk.bf16.vlgmr.msra.gmra.mrb[12].mxu0 %vm431_vm0, %v2638_v27 }
 0x461   : > { %2220 = vmatprep.mubr.msk.bf16.mxu0 %vm2476_vm1, %v2475_v9 }
 0x52b   : > { %v766_v25 = vpop.f32.mrb[8].mxu0 }
 0x52c   : > { %v2192_v26 = vpop.f32.mrb[9].mxu0  ;;  %v773_v63 = vpack.c.bf16 %v766_v25, %v766_v25 }
 0x52d   : > { %v769_v28 = vpop.f32.mrb[10].mxu0 }
 0x52e   : > { %v2193_v29 = vpop.f32.mrb[11].mxu0 }
 0x533   : > { %v898_v31 = vpop.f32.mrb[12].mxu0 }
 0x534   : > { %v899_v32 = vadd.f32 %v2013_v30, %v898_v31  ;;  %v2208_v33 = vpop.f32.mrb[13].mxu0  ;;  %v2036_v30 = vld [vmem:[%s2951_s5 + $0x2] ss:$0 sm:$0xff] }
 0x535   : > { %v901_v34 = vpop.f32.mrb[14].mxu0 }
 0x536   : > { %v970_v35 = vpack.c.bf16 %v899_v32, %v899_v32  ;;  %v2209_v36 = vpop.f32.mrb[15].mxu0 }
 0x538   : > { %v975_v38 = vsel %vm662_vm4, %v970_v35, 0 }
 0x539   : > { %2219 = vmatpush3.bf16.xpose.msra.mxu0 %v975_v38 }
 0x53a   : > { %2230 = vmatprep.subr.bf16.mxu0 %v2475_v9 }
 0x540   : > { %2221 = vmatmul.mubr.msk.bf16.vlgmr.msra.gmra.mrb[16].mxu0 %vm662_vm4, %v969_v40 }
 0x541   : > { %2232 = vmatprep.mubr.msk.bf16.mxu0 %vm2476_vm1, %v2475_v9  ;;  %2231 = vmatpush3.bf16.msra.mxu0 %v1085_v54 }
 0x542   : > { %2242 = vmatprep.subr.bf16.mxu0 %v2475_v9 }
 0x613   : > { %v1011_v41 = vpop.f32.mrb[16].mxu0 }
 0x614   : > { %v1017_v42 = vmul.f32 0.35355338, %v1011_v41  ;;  %v2222_v43 = vpop.f32.mrb[17].mxu0 }
 0x615   : > { %v1014_v44 = vpop.f32.mrb[18].mxu0 }
 0x616   : > { %v2223_v45 = vpop.f32.mrb[19].mxu0  ;;  %v1018_v46 = vsel %vm710_vm6, -1e+09, %v1017_v42 }
 0x617   : > { %v1019_v47 = vsel %vm662_vm4, %v1018_v46, -inf }
 0x618   : > { %1020 = vmax.xlane.f32.xlu0 %v1019_v47 }
 0x6a5   : > { %v1021_v48 = vpop.xlane.xlu0 %1020 }
 0x6a6   : > { %v1022_v49 = vsub.f32 %v1018_v46, %v1021_v48 }
 0x6a8   : > { %v1023_v50 = vmul.f32 1.442695, %v1022_v49 }
 0x6aa   : > { %2399 = vpow2.f32 %v1023_v50 }
 0x6b4   : > { %v2400_v51 = vpop.eup %2399 }
 0x6b5   : > { %v1025_v52 = vsel %vm662_vm4, %v2400_v51, 0.0 }
 0x6b6   : > { %1026 = vadd.xlane.f32.xlu1 %v1025_v52 }
 0x743   : > { %v1027_v55 = vpop.xlane.xlu1 %1026 }
 0x744   : > { %2401 = vrcp.f32 %v1027_v55 }
 0x74e   : > { %v2402_v57 = vpop.eup %2401 }
 0x74f   : > { %v1029_v59 = vmul.f32 %v2402_v57, %v2400_v51 }
 0x751   : > { %v1030_v60 = vpack.c.bf16 %v1029_v59, %v1029_v59  ;;  %v1484_v59 = vsel %vm728_vm5, %v2060_v58, 0 }
 0x753   : > { %2227 = vmatmul.mubr.msk.bf16.vlgmr.msra.gmra.mrb[16].mxu1 %vm662_vm4, %v1030_v60 }
 0x754   : > { %2237 = vmatpush3.bf16.msra.mxu1 %v1131_v61  ;;  %2238 = vmatprep.mubr.msk.bf16.mxu1 %vm2476_vm1, %v2475_v9 }
 0x755   : > { %2250 = vmatprep.subr.bf16.mxu1 %v2475_v9 }
 0x75b   : > { %2239 = vmatmul.mubr.msk.bf16.vlgmr.msra.gmra.mrb[20].mxu1 %vm662_vm4, %v773_v63  ;;  %v2385_v63 = vld [vmem:[%s2950_s4 + $0x30] sm:$0xff]  }
 0x75c   : > { %2251 = vmatpush3.bf16.msra.mxu1 %v2379_v62  ;;  %2254 = vmatprep.mubr.msk.bf16.mxu1 %vm2476_vm1, %v2475_v9 }
 0x75d   : > { %2252 = vmatprep.subr.bf16.mxu1 %v2475_v9 }
 0x760   : > { %2253 = vmatpush3.bf16.msra.mxu1 %v2380_v1 }
 0x761   : > { %2266 = vmatprep.subr.bf16.mxu1 %v2475_v9 }
 0x763   : > { %2255 = vmatmul.mubr.msk.bf16.vlgmr.msra.gmra.mrb[24].mxu1 %vm431_vm0, %v2638_v27 }
 0x764   : > { %2268 = vmatprep.mubr.msk.bf16.mxu1 %vm2476_vm1, %v2475_v9 }
 0x826   : > { %v1072_v2 = vpop.f32.mrb[16].mxu1 }
 0x827   : > { %v1080_v4 = vpack.c.bf16 %v1072_v2, %v1072_v2  ;;  %v2228_v5 = vpop.f32.mrb[17].mxu1  ;;  %v2386_v2 = vld [vmem:[%s2950_s4 + $0x38] sm:$0xff]  }
 0x828   : > { %v1075_v6 = vpop.f32.mrb[18].mxu1 }
 0x829   : > { %v2229_v7 = vpop.f32.mrb[19].mxu1  ;;  %2233 = vmatmul.mubr.msk.bf16.vlgmr.msra.gmra.mrb[20].mxu0 %vm662_vm4, %v1080_v4  ;;  %v2388_v4 = vld [vmem:[%s2954_s8 + $0x38] sm:$0xff]   ;;  %v2389_v6 = vld [vmem:[%s2952_s6 + $0x30] sm:$0xff]  }
 0x82a   : > { %2243 = vmatpush3.bf16.msra.mxu0 %v2381_v3  ;;  %2246 = vmatprep.mubr.msk.bf16.mxu0 %vm2476_vm1, %v2475_v9  ;;  %v2387_v3 = vld [vmem:[%s2954_s8 + $0x30] sm:$0xff]  }
 0x82b   : > { %2244 = vmatprep.subr.bf16.mxu0 %v2475_v9 }
 0x82e   : > { %v1167_v10 = vpop.f32.mrb[20].mxu1  ;;  %2245 = vmatpush3.bf16.msra.mxu0 %v2382_v8 }
 0x82f   : > { %v2240_v12 = vpop.f32.mrb[21].mxu1  ;;  %2258 = vmatprep.subr.bf16.mxu0 %v2475_v9 }
 0x830   : > { %v1170_v13 = vpop.f32.mrb[22].mxu1  ;;  %v2390_v12 = vld [vmem:[%s2952_s6 + $0x38] sm:$0xff]  }
 0x831   : > { %v2241_v14 = vpop.f32.mrb[23].mxu1  ;;  %2247 = vmatmul.mubr.msk.bf16.vlgmr.msra.gmra.mrb[24].mxu0 %vm431_vm0, %v2638_v27 }
 0x832   : > { %2259 = vmatpush3.bf16.msra.mxu0 %v2383_v11  ;;  %2262 = vmatprep.mubr.msk.bf16.mxu0 %vm2476_vm1, %v2475_v9 }
 0x833   : > { %2260 = vmatprep.subr.bf16.mxu0 %v2475_v9 }
 0x836   : > { %v1297_v17 = vpop.f32.mrb[24].mxu1  ;;  %2261 = vmatpush3.bf16.msra.mxu0 %v2384_v15 }
 0x837   : > { %v1298_v18 = vadd.f32 %v2045_v16, %v1297_v17  ;;  %v2256_v19 = vpop.f32.mrb[25].mxu1  ;;  %2272 = vmatprep.subr.bf16.mxu0 %v2475_v9  ;;  %v2085_v17 = vld [vmem:[%s2955_s9 + $0x3] ss:$0 sm:$0xff] }
 0x838   : > { %v1300_v20 = vpop.f32.mrb[26].mxu1 }
 0x839   : > { %v1369_v21 = vpack.c.bf16 %v1298_v18, %v1298_v18  ;;  %v2257_v22 = vpop.f32.mrb[27].mxu1  ;;  %2263 = vmatmul.mubr.msk.bf16.vlgmr.msra.gmra.mrb[28].mxu0 %vm431_vm0, %v2638_v27 }
 0x83a   : > { %2274 = vmatprep.mubr.msk.bf16.mxu0 %vm2476_vm1, %v2475_v9 }
 0x83b   : > { %v1374_v23 = vsel %vm662_vm4, %v1369_v21, 0 }
 0x83c   : > { %2267 = vmatpush3.bf16.xpose.msra.mxu1 %v1374_v23 }
 0x83d   : > { %2278 = vmatprep.subr.bf16.mxu1 %v2475_v9 }
 0x8fc   : > { %v1121_v24 = vpop.f32.mrb[20].mxu0 }
 0x8fd   : > { %v2804_v25 = vadd.f32 %v1167_v10, %v1121_v24  ;;  %v2234_v26 = vpop.f32.mrb[21].mxu0 }
 0x8fe   : > { %v1124_v28 = vpop.f32.mrb[22].mxu0 }
 0x8ff   : > { %v2235_v29 = vpop.f32.mrb[23].mxu0 }
 0x904   : > { %v1232_v31 = vpop.f32.mrb[24].mxu0 }
 0x905   : > { %v1233_v32 = vadd.f32 %v2036_v30, %v1232_v31  ;;  %v2248_v33 = vpop.f32.mrb[25].mxu0  ;;  %v2076_v31 = vld [vmem:[%s2953_s7 + $0x3] ss:$0 sm:$0xff] }
 0x906   : > { %v1235_v34 = vpop.f32.mrb[26].mxu0 }
 0x907   : > { %v1368_v35 = vpack.c.bf16 %v1233_v32, %v1233_v32  ;;  %v2249_v36 = vpop.f32.mrb[27].mxu0 }
 0x909   : > { %2269 = vmatmul.mubr.msk.bf16.vlgmr.msra.gmra.mrb[28].mxu1 %vm662_vm4, %v1368_v35 }
 0x90a   : > { %2280 = vmatprep.mubr.msk.bf16.mxu1 %vm2476_vm1, %v2475_v9  ;;  %2279 = vmatpush3.bf16.msra.mxu1 %v1484_v59 }
 0x90b   : > { %2292 = vmatprep.subr.bf16.mxu1 %v2475_v9 }
 0x90c   : > { %v1362_v38 = vpop.f32.mrb[28].mxu0 }
 0x90d   : > { %v1363_v39 = vadd.f32 %v2054_v37, %v1362_v38  ;;  %v2264_v40 = vpop.f32.mrb[29].mxu0  ;;  %v2067_v38 = vld [vmem:[%s2951_s5 + $0x3] ss:$0 sm:$0xff] }
 0x90e   : > { %v1365_v41 = vpop.f32.mrb[30].mxu0 }
 0x90f   : > { %v1430_v42 = vpack.c.bf16 %v1363_v39, %v1363_v39  ;;  %v2265_v43 = vpop.f32.mrb[31].mxu0 }
 0x911   : > { %v1435_v44 = vsel %vm728_vm5, %v1430_v42, 0 }
 0x912   : > { %2273 = vmatpush3.bf16.msra.mxu0 %v1435_v44 }
 0x913   : > { %2284 = vmatprep.subr.bf16.mxu0 %v2475_v9 }
 0x9dc   : > { %v1410_v45 = vpop.f32.mrb[28].mxu1 }
 0x9dd   : > { %v1416_v46 = vmul.f32 0.35355338, %v1410_v45  ;;  %v2270_v47 = vpop.f32.mrb[29].mxu1 }
 0x9de   : > { %v1413_v48 = vpop.f32.mrb[30].mxu1 }
 0x9df   : > { %v2271_v49 = vpop.f32.mrb[31].mxu1  ;;  %v1417_v50 = vsel %vm710_vm6, -1e+09, %v1416_v46 }
 0x9e0   : > { %v1418_v51 = vsel %vm662_vm4, %v1417_v50, -inf }
 0x9e1   : > { %1419 = vmax.xlane.f32.xlu0 %v1418_v51 }
 0xa6e   : > { %v1420_v52 = vpop.xlane.xlu0 %1419 }
 0xa6f   : > { %v1421_v53 = vsub.f32 %v1417_v50, %v1420_v52 }
 0xa71   : > { %v1422_v54 = vmul.f32 1.442695, %v1421_v53 }
 0xa73   : > { %2403 = vpow2.f32 %v1422_v54 }
 0xa7d   : > { %v2404_v55 = vpop.eup %2403 }
 0xa7e   : > { %v1424_v57 = vsel %vm662_vm4, %v2404_v55, 0.0 }
 0xa7f   : > { %1425 = vadd.xlane.f32.xlu1 %v1424_v57 }
 0xb0c   : > { %v1426_v60 = vpop.xlane.xlu1 %1425 }
 0xb0d   : > { %2405 = vrcp.f32 %v1426_v60 }
 0xb17   : > { %v2406_v61 = vpop.eup %2405 }
 0xb18   : > { %v1428_v62 = vmul.f32 %v2406_v61, %v2404_v55 }
 0xb1a   : > { %v1429_v1 = vpack.c.bf16 %v1428_v62, %v1428_v62 }
 0xb1c   : > { %2275 = vmatmul.mubr.msk.bf16.vlgmr.msra.gmra.mrb[32].mxu0 %vm662_vm4, %v1429_v1 }
 0xb1d   : > { %2285 = vmatpush3.bf16.msra.mxu0 %v2385_v63  ;;  %2288 = vmatprep.mubr.msk.bf16.mxu0 %vm2476_vm1, %v2475_v9 }
 0xb1e   : > { %2286 = vmatprep.subr.bf16.mxu0 %v2475_v9 }
 0xb21   : > { %2287 = vmatpush3.bf16.msra.mxu0 %v2386_v2 }
 0xb22   : > { %2300 = vmatprep.subr.bf16.mxu0 %v2475_v9 }
 0xb24   : > { %2289 = vmatmul.mubr.msk.bf16.vlgmr.msra.gmra.mrb[36].mxu0 %vm431_vm0, %v2638_v27 }
 0xb25   : > { %2301 = vmatpush3.bf16.msra.mxu0 %v2387_v3  ;;  %2304 = vmatprep.mubr.msk.bf16.mxu0 %vm2476_vm1, %v2475_v9  ;;  %v2093_v3 = vld [vmem:[%s2957_s11] ss:$0 sm:$0xff] }
 0xb26   : > { %2302 = vmatprep.subr.bf16.mxu0 %v2475_v9 }
 0xb29   : > { %2303 = vmatpush3.bf16.msra.mxu0 %v2388_v4 }
 0xb2a   : > { %2314 = vmatprep.subr.bf16.mxu0 %v2475_v9 }
 0xb2c   : > { %2305 = vmatmul.mubr.msk.bf16.vlgmr.msra.gmra.mrb[40].mxu0 %vm431_vm0, %v2638_v27 }
 0xb2d   : > { %2316 = vmatprep.mubr.msk.bf16.mxu0 %vm2476_vm1, %v2475_v9 }
 0xbef   : > { %v1471_v5 = vpop.f32.mrb[32].mxu0 }
 0xbf0   : > { %v1479_v7 = vpack.c.bf16 %v1471_v5, %v1471_v5  ;;  %v2276_v8 = vpop.f32.mrb[33].mxu0 }
 0xbf1   : > { %v1474_v10 = vpop.f32.mrb[34].mxu0 }
 0xbf2   : > { %v2277_v11 = vpop.f32.mrb[35].mxu0  ;;  %2281 = vmatmul.mubr.msk.bf16.vlgmr.msra.gmra.mrb[32].mxu1 %vm662_vm4, %v1479_v7 }
 0xbf3   : > { %2293 = vmatpush3.bf16.msra.mxu1 %v2389_v6  ;;  %2296 = vmatprep.mubr.msk.bf16.mxu1 %vm2476_vm1, %v2475_v9 }
 0xbf4   : > { %2294 = vmatprep.subr.bf16.mxu1 %v2475_v9 }
 0xbf7   : > { %v1586_v13 = vpop.f32.mrb[36].mxu0  ;;  %2295 = vmatpush3.bf16.msra.mxu1 %v2390_v12 }
 0xbf8   : > { %v2290_v14 = vpop.f32.mrb[37].mxu0  ;;  %2308 = vmatprep.subr.bf16.mxu1 %v2475_v9 }
 0xbf9   : > { %v1589_v15 = vpop.f32.mrb[38].mxu0 }
 0xbfa   : > { %v2291_v16 = vpop.f32.mrb[39].mxu0  ;;  %2297 = vmatmul.mubr.msk.bf16.vlgmr.msra.gmra.mrb[36].mxu1 %vm431_vm0, %v2638_v27 }
 0xbfb   : > { %2310 = vmatprep.mubr.msk.bf16.mxu1 %vm2476_vm1, %v2475_v9 }
 0xbff   : > { %v1716_v18 = vpop.f32.mrb[40].mxu0 }
 0xc00   : > { %v1717_v19 = vadd.f32 %v2085_v17, %v1716_v18  ;;  %v2306_v20 = vpop.f32.mrb[41].mxu0 }
 0xc01   : > { %v1719_v21 = vpop.f32.mrb[42].mxu0 }
 0xc02   : > { %v1784_v22 = vpack.c.bf16 %v1717_v19, %v1717_v19  ;;  %v2307_v23 = vpop.f32.mrb[43].mxu0 }
 0xc04   : > { %v1789_v24 = vsel %vm728_vm5, %v1784_v22, 0 }
 0xc05   : > { %2315 = vmatpush3.bf16.msra.mxu0 %v1789_v24 }
 0xcc5   : > { %v1520_v26 = vpop.f32.mrb[32].mxu1 }
 0xcc6   : > { %v1526_v28 = vadd.f32 %v1520_v26, %v2804_v25  ;;  %v2282_v27 = vpop.f32.mrb[33].mxu1  ;;  %v1587_v25 = vadd.f32 %v2067_v38, %v1586_v13 }
 0xcc7   : > { %v1523_v29 = vpop.f32.mrb[34].mxu1 }
 0xcc8   : > { %v2283_v30 = vpop.f32.mrb[35].mxu1  ;;  %v1722_v40 = vpack.c.bf16 %v1587_v25, %v1587_v25 }
 0xccd   : > { %v1651_v32 = vpop.f32.mrb[36].mxu1 }
 0xcce   : > { %v1652_v33 = vadd.f32 %v2076_v31, %v1651_v32  ;;  %v2298_v34 = vpop.f32.mrb[37].mxu1 }
 0xccf   : > { %v1654_v35 = vpop.f32.mrb[38].mxu1 }
 0xcd0   : > { %v1723_v36 = vpack.c.bf16 %v1652_v33, %v1652_v33  ;;  %v2299_v37 = vpop.f32.mrb[39].mxu1 }
 0xcd2   : > { %v1728_v39 = vsel %vm662_vm4, %v1723_v36, 0 }
 0xcd3   : > { %2309 = vmatpush3.bf16.xpose.msra.mxu1 %v1728_v39 }
 0xcd4   : > { %2320 = vmatprep.subr.bf16.mxu1 %v2475_v9 }
 0xcda   : > { %2311 = vmatmul.mubr.msk.bf16.vlgmr.msra.gmra.mrb[40].mxu1 %vm662_vm4, %v1722_v40 }
 0xcdb   : > { %2322 = vmatprep.mubr.msk.bf16.mxu1 %vm2476_vm1, %v2475_v9  ;;  %v2091_v9 = vld [vmem:[%s2956_s10 + $0xc] sm:$0xf] }
 0xcdc   : > { %v1838_v53 = vsel %vm728_vm5, %v2091_v9, 0 }
 0xcdd   : > { %2321 = vmatpush3.bf16.msra.mxu1 %v1838_v53 }
 0xdad   : > { %v1764_v41 = vpop.f32.mrb[40].mxu1 }
 0xdae   : > { %v1770_v42 = vmul.f32 0.35355338, %v1764_v41  ;;  %v2312_v43 = vpop.f32.mrb[41].mxu1 }
 0xdaf   : > { %v1767_v44 = vpop.f32.mrb[42].mxu1 }
 0xdb0   : > { %v2313_v45 = vpop.f32.mrb[43].mxu1  ;;  %v1771_v46 = vsel %vm710_vm6, -1e+09, %v1770_v42 }
 0xdb1   : > { %v1772_v47 = vsel %vm662_vm4, %v1771_v46, -inf }
 0xdb2   : > { %1773 = vmax.xlane.f32.xlu0 %v1772_v47 }
 0xe3f   : > { %v1774_v48 = vpop.xlane.xlu0 %1773 }
 0xe40   : > { %v1775_v49 = vsub.f32 %v1771_v46, %v1774_v48 }
 0xe42   : > { %v1776_v50 = vmul.f32 1.442695, %v1775_v49 }
 0xe44   : > { %2407 = vpow2.f32 %v1776_v50 }
 0xe4e   : > { %v2408_v51 = vpop.eup %2407 }
 0xe4f   : > { %v1778_v52 = vsel %vm662_vm4, %v2408_v51, 0.0 }
 0xe50   : > { %1779 = vadd.xlane.f32.xlu1 %v1778_v52 }
 0xedd   : > { %v1780_v56 = vpop.xlane.xlu1 %1779 }
 0xede   : > { %2409 = vrcp.f32 %v1780_v56 }
 0xee8   : > { %v2410_v54 = vpop.eup %2409 }
 0xee9   : > { %v1782_v55 = vmul.f32 %v2410_v54, %v2408_v51 }
 0xeeb   : > { %v1783_v57 = vpack.c.bf16 %v1782_v55, %v1782_v55 }
 0xeed   : > { %2317 = vmatmul.mubr.msk.bf16.vlgmr.msra.gmra.mrb[44].mxu0 %vm662_vm4, %v1783_v57 }
 0xfc0   : > { %v1825_v58 = vpop.f32.mrb[44].mxu0 }
 0xfc1   : > { %v1833_v59 = vpack.c.bf16 %v1825_v58, %v1825_v58  ;;  %v2318_v60 = vpop.f32.mrb[45].mxu0 }
 0xfc2   : > { %v1828_v61 = vpop.f32.mrb[46].mxu0 }
 0xfc3   : > { %v2319_v62 = vpop.f32.mrb[47].mxu0  ;;  %2323 = vmatmul.mubr.msk.bf16.vlgmr.msra.gmra.mrb[44].mxu1 %vm662_vm4, %v1833_v59 }
0x1096   : > { %v1874_v63 = vpop.f32.mrb[44].mxu1 }
0x1097   : > { %v1880_v1 = vadd.f32 %v1874_v63, %v1526_v28  ;;  %v2324_v2 = vpop.f32.mrb[45].mxu1 }
0x1098   : > { %v1877_v4 = vpop.f32.mrb[46].mxu1 }
0x1099   : > { %v1881_v5 = vadd.f32 %v1880_v1, %v2601_v0  ;;  %v2325_v6 = vpop.f32.mrb[47].mxu1 }
0x109b   : > { %v1889_v7 = vadd.f32 %v2093_v3, %v1881_v5 }
0x109d   : > { %1890 = vst.msk [vmem:[%s417_s26] sm:$0xff] %vm431_vm0, %v1889_v7 }
0x109e   : > { %2424 = shalt.err (!%p2421_p3)
}
0x109f   : > { %s2425_s15 = scalar_lea.hbm %s2903_s0, 128  ;;  %s2429_s29 = scalar_lea.hbm %s2958_s12, 256 }
0x10a0   : > { %p2426_p4 = scmp.ne.s32.totalorder %s2903_s0, %s2425_s15  ;;  %p2430_p9 = scmp.lt.u32.totalorder %s2903_s0, %s2958_s12 }
0x10a1   : > { %p2431_p10 = scmp.lt.u32.totalorder %s2429_s29, %s2425_s15  ;;  %p2433_p12 = scmp.lt.u32.totalorder %s2425_s15, %s2903_s0 }
0x10a2   : > { %p2427_p7 = pnand %p2426_p4, %p2581_p5 }
0x10a3   : > { %p2432_p11 = por %p2431_p10, %p2430_p9 }
0x10a4   : > { %p2428_p8 = pneg %p2427_p7 }
0x10a5   : > { %p2434_p13 = por %p2433_p12, %p2432_p11 }
0x10a7   : > { %p2435_p0 = pnand %p2434_p13, %p2428_p8 }
0x10a9   : > { %2438 = shalt.err (!%p2435_p0)
}
0x10aa   : > { %2326 = dma.vmem_to_hbm [thread:$0]  (%p2581_p5), %s2905_s28, 128, %s2903_s0, %s1892_s18  }
0x10ab PF: > { %p2332_p1 = scmp.ge.s32.totalorder %s2473_s24, 2  ;;  %s1917_s1 = sand.u32 1, %s2461_s21  }
0x10ac   : > { %s1918_s25 = scalar_lea.sflag [#allocation3], %s1917_s1 }
0x10ad   : > { %p2329_p2 = pnand %p2332_p1, %p2585_p6 }
0x10af   : > { %2456 = dma.done.wait (!%p2329_p2), %s1918_s25, 128  }
0x10b0   : > { %2458 = vsyncadd (!%p2329_p2), %s1918_s25, 4294967168  ;;  %p22_p3 = scmp.ge.s32.totalorder %s2568_s27, 4   ;;  %s2965_s21 = smov %s2465_s22 }
0x10b1   : > { %s2966_s22 = smov %s2469_s23  ;;  %s2967_s23 = smov %s2579_s30 }
0x10b2   : > { %s2968_s24 = smov %s2568_s27  ;;  %24 = sbr.rel (!%p22_p3) target bundleno = 6 (0x6), region = 127 }
0x10b9   :  { %1923 = vsyncpa [#allocation3], 1 }
0x10ba   :  { %1925 = vsyncpa [#allocation3 + $0x1], 1 }

</bundles_post_ra>
